<compile_context>
chip_gen: v6e
topology: v6e:2x2x1
jax: 0.10.0
libtpu: 0.0.40
codegen_flags: <defaults>
</compile_context>

<pallas_src>
import jax
import jax.numpy as jnp
from jax.experimental import pallas as pl
from jax.experimental.pallas import tpu as pltpu

NUM_ROTATIONS = 3
D_IN, D_H1, D_H2 = 1024, 512, 256
D_OUT = 9 * NUM_ROTATIONS   # 27  (true output width)
D_OUT_PAD = 128             # lane-dense padded output width


def _mlp_kernel(x_ref, w1_ref, b1_ref, w2_ref, b2_ref, w3_ref, b3_ref, o_ref):
    # fc1 (+ folded bn1) + relu      (dropout == identity in eval mode)
    h = jnp.dot(x_ref[...], w1_ref[...], preferred_element_type=jnp.float32)
    h = jnp.maximum(h + b1_ref[...], 0.0)

    # fc2 (+ folded bn2) + relu
    h = jnp.dot(h, w2_ref[...], preferred_element_type=jnp.float32)
    h = jnp.maximum(h + b2_ref[...], 0.0)

    # fc3 (+ folded bn3) + sigmoid (exp/recip go to the otherwise-idle EUP)
    h = jnp.dot(h, w3_ref[...], preferred_element_type=jnp.float32)
    o_ref[...] = jax.nn.sigmoid(h + b3_ref[...])


def _fold_bn_into_linear(w, b, bn, eps=1e-5):
    """Fold eval-mode BatchNorm into the preceding Linear: y = x @ W' + b'."""
    gamma, beta, running_mean, running_var = bn
    scale = gamma / jnp.sqrt(running_var + eps)
    shift = beta - running_mean * scale
    return w * scale[None, :], b * scale + shift


def _choose_tile_b(B):
    """MXU-friendly batch tile; keep >=2 grid steps when the batch permits."""
    if B >= 512:
        return 256
    half = -(-B // 2)                  # ceil(B/2) -> at least 2 grid steps
    return max(8, ((half + 7) // 8) * 8)


def transformation_forward(x, params, *, tile_b=None):
    """x: (B, 1024) float32 -> (B, NUM_ROTATIONS, 3, 3) float32."""
    B = x.shape[0]
    x = x.astype(jnp.float32)
    if tile_b is None:
        tile_b = _choose_tile_b(B)

    (w1, b1, bn1), (w2, b2, bn2), (w3, b3, bn3) = params
    w1f, b1f = _fold_bn_into_linear(w1, b1, bn1)
    w2f, b2f = _fold_bn_into_linear(w2, b2, bn2)
    w3f, b3f = _fold_bn_into_linear(w3, b3, bn3)

    # Zero-pad fc3 output columns 27 -> 128 (lane-dense output / full MXU tile).
    w3p = jnp.zeros((D_H2, D_OUT_PAD), jnp.float32).at[:, :D_OUT].set(w3f)
    b3p = jnp.zeros((D_OUT_PAD,), jnp.float32).at[:D_OUT].set(b3f)

    # Biases as (1, D) rows for broadcasting inside the kernel.
    b1f = b1f[None, :]
    b2f = b2f[None, :]
    b3p = b3p[None, :]

    # Pad the batch to a multiple of tile_b.
    n_tiles = pl.cdiv(B, tile_b)
    b_pad = n_tiles * tile_b
    if b_pad != B:
        x = jnp.pad(x, ((0, b_pad - B), (0, 0)))

    full = lambda shape: pl.BlockSpec(shape, lambda i: (0, 0))

    out = pl.pallas_call(
        _mlp_kernel,
        out_shape=jax.ShapeDtypeStruct((b_pad, D_OUT_PAD), jnp.float32),
        grid_spec=pltpu.PrefetchScalarGridSpec(
            num_scalar_prefetch=0,
            grid=(n_tiles,),
            in_specs=[
                pl.BlockSpec((tile_b, D_IN), lambda i: (i, 0)),
                full((D_IN, D_H1)), full((1, D_H1)),
                full((D_H1, D_H2)), full((1, D_H2)),
                full((D_H2, D_OUT_PAD)), full((1, D_OUT_PAD)),
            ],
            out_specs=pl.BlockSpec((tile_b, D_OUT_PAD), lambda i: (i, 0)),
        ),
        compiler_params=pltpu.CompilerParams(
            dimension_semantics=("parallel",)),
    )(x, w1f, b1f, w2f, b2f, w3p, b3p)

    return out[:B, :D_OUT].reshape(-1, NUM_ROTATIONS, 3, 3)


def init_params(key):
    """Deterministic synthetic parameters matching the PyTorch module shapes."""
    ks = jax.random.split(key, 9)

    def linear(kw, kb, fan_in, fan_out):
        bound = 1.0 / jnp.sqrt(fan_in)
        # stored as (in, out) == torch weight (out, in) transposed
        w = jax.random.uniform(kw, (fan_in, fan_out), jnp.float32, -bound, bound)
        b = jax.random.uniform(kb, (fan_out,), jnp.float32, -bound, bound)
        return w, b

    def bn(kg, n):
        gamma = 1.0 + 0.1 * jax.random.normal(kg, (n,), jnp.float32)
        beta = 0.05 * jnp.arange(n, dtype=jnp.float32) / n
        running_mean = 0.01 * jnp.arange(n, dtype=jnp.float32) / n
        running_var = jnp.ones((n,), jnp.float32)
        return gamma, beta, running_mean, running_var

    w1, b1 = linear(ks[0], ks[1], D_IN, D_H1)
    w2, b2 = linear(ks[2], ks[3], D_H1, D_H2)
    w3, b3 = linear(ks[4], ks[5], D_H2, D_OUT)
    return ((w1, b1, bn(ks[6], D_H1)),
            (w2, b2, bn(ks[7], D_H2)),
            (w3, b3, bn(ks[8], D_OUT)))


def _reference(x, params):
    """Pure-JAX reference for sanity checking (eval-mode BN, no dropout)."""
    def fold(bn, eps=1e-5):
        gamma, beta, mean, var = bn
        s = gamma / jnp.sqrt(var + eps)
        return s, beta - mean * s

    (w1, b1, bn1), (w2, b2, bn2), (w3, b3, bn3) = params
    s1, t1 = fold(bn1)
    s2, t2 = fold(bn2)
    s3, t3 = fold(bn3)
    h = jnp.maximum((x @ w1 + b1) * s1 + t1, 0.0)
    h = jnp.maximum((h @ w2 + b2) * s2 + t2, 0.0)
    h = jax.nn.sigmoid((h @ w3 + b3) * s3 + t3)
    return h.reshape(-1, NUM_ROTATIONS, 3, 3)


if __name__ == "__main__":
    key = jax.random.PRNGKey(0)
    kp, kx = jax.random.split(key)
    params = init_params(kp)

    B = 16  # small batch (input width 1024 is fixed by the module)
    x = jax.random.normal(kx, (B, D_IN), jnp.float32)

    y = transformation_forward(x, params)
    y = jax.block_until_ready(y)

    y_ref = _reference(x, params)
    assert y.shape == (B, NUM_ROTATIONS, 3, 3), y.shape
    assert jnp.allclose(y, y_ref, atol=1e-5, rtol=1e-5), float(
        jnp.max(jnp.abs(y - y_ref)))

    # TODO(synk): dropout omitted (identity in eval mode); BN uses eval-mode
    # running statistics folded into the Linear weights/biases.
    print("KERNEL_OK")
</pallas_src>

<mosaic_0001>
module attributes {stable_mosaic.version = 11 : i64} {
  func.func @_mlp_kernel(%arg0: i32, %arg1: memref<8x1024xf32, #tpu.memory_space<vmem>>, %arg2: memref<1024x512xf32, #tpu.memory_space<vmem>>, %arg3: memref<1x512xf32, #tpu.memory_space<vmem>>, %arg4: memref<512x256xf32, #tpu.memory_space<vmem>>, %arg5: memref<1x256xf32, #tpu.memory_space<vmem>>, %arg6: memref<256x128xf32, #tpu.memory_space<vmem>>, %arg7: memref<1x128xf32, #tpu.memory_space<vmem>>, %arg8: memref<8x128xf32, #tpu.memory_space<vmem>>) attributes {dimension_semantics = [#tpu.dimension_semantics<parallel>], iteration_bounds = array<i64: 2>, scalar_prefetch = 0 : i64, scratch_operands = 0 : i64, tpu.core_type = #tpu.core_type<tc>, window_params = [{transform_indices = @transform_0, window_bounds = array<i64: 8, 1024>}, {pipeline_mode = #tpu.pipeline_mode<synchronous>, transform_indices = @transform_1, window_bounds = array<i64: 1024, 512>}, {pipeline_mode = #tpu.pipeline_mode<synchronous>, transform_indices = @transform_2, window_bounds = array<i64: 1, 512>}, {pipeline_mode = #tpu.pipeline_mode<synchronous>, transform_indices = @transform_3, window_bounds = array<i64: 512, 256>}, {pipeline_mode = #tpu.pipeline_mode<synchronous>, transform_indices = @transform_4, window_bounds = array<i64: 1, 256>}, {pipeline_mode = #tpu.pipeline_mode<synchronous>, transform_indices = @transform_5, window_bounds = array<i64: 256, 128>}, {pipeline_mode = #tpu.pipeline_mode<synchronous>, transform_indices = @transform_6, window_bounds = array<i64: 1, 128>}, {transform_indices = @transform_7, window_bounds = array<i64: 8, 128>}]} {
    %c0 = arith.constant 0 : index
    %c0_0 = arith.constant 0 : index
    %0 = vector.load %arg1[%c0, %c0_0] : memref<8x1024xf32, #tpu.memory_space<vmem>>, vector<8x1024xf32>
    %c0_1 = arith.constant 0 : index
    %c0_2 = arith.constant 0 : index
    %1 = vector.load %arg2[%c0_1, %c0_2] : memref<1024x512xf32, #tpu.memory_space<vmem>>, vector<1024x512xf32>
    %cst = arith.constant dense<0.000000e+00> : vector<8x512xf32>
    %2 = tpu.matmul %0, %1, %cst {dimension_numbers = #tpu.dot_dimension_numbers<[1], [0], [0], [1], [0, 0, 1, 1], [], []>} : vector<8x1024xf32>, vector<1024x512xf32>, vector<8x512xf32> -> vector<8x512xf32>
    %c0_3 = arith.constant 0 : index
    %c0_4 = arith.constant 0 : index
    %3 = vector.load %arg3[%c0_3, %c0_4] : memref<1x512xf32, #tpu.memory_space<vmem>>, vector<1x512xf32>
    %4 = vector.broadcast %3 : vector<1x512xf32> to vector<8x512xf32>
    %5 = arith.addf %2, %4 : vector<8x512xf32>
    %cst_5 = arith.constant 0.000000e+00 : f32
    %6 = vector.broadcast %cst_5 : f32 to vector<8x512xf32>
    %7 = arith.maximumf %5, %6 : vector<8x512xf32>
    %c0_6 = arith.constant 0 : index
    %c0_7 = arith.constant 0 : index
    %8 = vector.load %arg4[%c0_6, %c0_7] : memref<512x256xf32, #tpu.memory_space<vmem>>, vector<512x256xf32>
    %cst_8 = arith.constant dense<0.000000e+00> : vector<8x256xf32>
    %9 = tpu.matmul %7, %8, %cst_8 {dimension_numbers = #tpu.dot_dimension_numbers<[1], [0], [0], [1], [0, 0, 1, 1], [], []>} : vector<8x512xf32>, vector<512x256xf32>, vector<8x256xf32> -> vector<8x256xf32>
    %c0_9 = arith.constant 0 : index
    %c0_10 = arith.constant 0 : index
    %10 = vector.load %arg5[%c0_9, %c0_10] : memref<1x256xf32, #tpu.memory_space<vmem>>, vector<1x256xf32>
    %11 = vector.broadcast %10 : vector<1x256xf32> to vector<8x256xf32>
    %12 = arith.addf %9, %11 : vector<8x256xf32>
    %cst_11 = arith.constant 0.000000e+00 : f32
    %13 = vector.broadcast %cst_11 : f32 to vector<8x256xf32>
    %14 = arith.maximumf %12, %13 : vector<8x256xf32>
    %c0_12 = arith.constant 0 : index
    %c0_13 = arith.constant 0 : index
    %15 = vector.load %arg6[%c0_12, %c0_13] : memref<256x128xf32, #tpu.memory_space<vmem>>, vector<256x128xf32>
    %cst_14 = arith.constant dense<0.000000e+00> : vector<8x128xf32>
    %16 = tpu.matmul %14, %15, %cst_14 {dimension_numbers = #tpu.dot_dimension_numbers<[1], [0], [0], [1], [0, 0, 1, 1], [], []>} : vector<8x256xf32>, vector<256x128xf32>, vector<8x128xf32> -> vector<8x128xf32>
    %c0_15 = arith.constant 0 : index
    %c0_16 = arith.constant 0 : index
    %17 = vector.load %arg7[%c0_15, %c0_16] : memref<1x128xf32, #tpu.memory_space<vmem>>, vector<1x128xf32>
    %18 = vector.broadcast %17 : vector<1x128xf32> to vector<8x128xf32>
    %19 = arith.addf %16, %18 : vector<8x128xf32>
    %20 = arith.negf %19 : vector<8x128xf32>
    %21 = math.exp %20 : vector<8x128xf32>
    %cst_17 = arith.constant 1.000000e+00 : f32
    %22 = vector.broadcast %cst_17 : f32 to vector<8x128xf32>
    %23 = arith.addf %22, %21 : vector<8x128xf32>
    %24 = arith.divf %22, %23 : vector<8x128xf32>
    %c0_18 = arith.constant 0 : index
    %c0_19 = arith.constant 0 : index
    %25 = vector.load %arg8[%c0_18, %c0_19] : memref<8x128xf32, #tpu.memory_space<vmem>>, vector<8x128xf32>
    tpu.vector_store %arg8[%c0_18, %c0_19], %24 {strides = array<i32>} : memref<8x128xf32, #tpu.memory_space<vmem>>, vector<8x128xf32>,
    return
  }
  func.func @transform_0(%arg0: i32) -> (i32, i32) {
    %c0_i32 = arith.constant 0 : i32
    %c0_i32_0 = arith.constant 0 : i32
    return %arg0, %c0_i32 : i32, i32
  }
  func.func @transform_1(%arg0: i32) -> (i32, i32) {
    %c0_i32 = arith.constant 0 : i32
    %c0_i32_0 = arith.constant 0 : i32
    %c0_i32_1 = arith.constant 0 : i32
    return %c0_i32, %c0_i32_0 : i32, i32
  }
  func.func @transform_2(%arg0: i32) -> (i32, i32) {
    %c0_i32 = arith.constant 0 : i32
    %c0_i32_0 = arith.constant 0 : i32
    %c0_i32_1 = arith.constant 0 : i32
    return %c0_i32, %c0_i32_0 : i32, i32
  }
  func.func @transform_3(%arg0: i32) -> (i32, i32) {
    %c0_i32 = arith.constant 0 : i32
    %c0_i32_0 = arith.constant 0 : i32
    %c0_i32_1 = arith.constant 0 : i32
    return %c0_i32, %c0_i32_0 : i32, i32
  }
  func.func @transform_4(%arg0: i32) -> (i32, i32) {
    %c0_i32 = arith.constant 0 : i32
    %c0_i32_0 = arith.constant 0 : i32
    %c0_i32_1 = arith.constant 0 : i32
    return %c0_i32, %c0_i32_0 : i32, i32
  }
  func.func @transform_5(%arg0: i32) -> (i32, i32) {
    %c0_i32 = arith.constant 0 : i32
    %c0_i32_0 = arith.constant 0 : i32
    %c0_i32_1 = arith.constant 0 : i32
    return %c0_i32, %c0_i32_0 : i32, i32
  }
  func.func @transform_6(%arg0: i32) -> (i32, i32) {
    %c0_i32 = arith.constant 0 : i32
    %c0_i32_0 = arith.constant 0 : i32
    %c0_i32_1 = arith.constant 0 : i32
    return %c0_i32, %c0_i32_0 : i32, i32
  }
  func.func @transform_7(%arg0: i32) -> (i32, i32) {
    %c0_i32 = arith.constant 0 : i32
    %c0_i32_0 = arith.constant 0 : i32
    return %arg0, %c0_i32 : i32, i32
  }
}

</mosaic_0001>

<bundles_post_ra>
// kernel: tpu_custom_call.1
= control target key start
LH: loop header
LB: loop body
LE: loop exit
PB: predicated region body
PF: predicated region fallthrough
CT: control target
= control target key end

     0   :  { %s2797_s0 = inlined_call_operand.hbm [shape: f32[16,1024], index: 0, kind: input, shape index: {}]   ;;  %s2798_s1 = inlined_call_operand.hbm [shape: f32[1024,512], index: 1, kind: input, shape index: {}]   ;;  %s2799_s2 = inlined_call_operand.hbm [shape: f32[1,512], index: 2, kind: input, shape index: {}]   ;;  %s2800_s3 = inlined_call_operand.hbm [shape: f32[512,256], index: 3, kind: input, shape index: {}]   ;;  %s2801_s4 = inlined_call_operand.hbm [shape: f32[1,256], index: 4, kind: input, shape index: {}]   ;;  %s2802_s5 = inlined_call_operand.hbm [shape: f32[256,128], index: 5, kind: input, shape index: {}]   ;;  %s2803_s6 = inlined_call_operand.hbm [shape: f32[1,128], index: 6, kind: input, shape index: {}]   ;;  %s2804_s7 = inlined_call_operand.hbm [shape: f32[16,128], index: 7, kind: output, shape index: {}]  }
   0x1   :  { %2809 = sst [smem:[#allocation20_spill]] %s2798_s1 }
   0x2   :  { %2810 = sst [smem:[#allocation21_spill]] %s2799_s2 }
   0x3   :  { %12 = vsyncpa [#allocation3], 0 }
   0x4   :  { %14 = vsyncpa [#allocation3 + $0x1], 0 }
   0x5   :  { %15 = vsyncpa [#allocation6], 0 }
   0x6   :  { %16 = vsyncpa [#allocation9], 0 }
   0x7   :  { %17 = vsyncpa [#allocation12], 0 }
   0x8   :  { %18 = vsyncpa [#allocation4], 0 }
   0x9   :  { %20 = vsyncpa [#allocation4 + $0x1], 0  ;;  %s2535_s24 = smov 0   ;;  %s2537_s25 = smov 0  }
   0xa   :  { %s2539_s26 = smov 0   ;;  %s2541_s27 = smov 0  }
   0xb LB: > { %s2481_s28 = smov [#allocation5]   ;;  %s2556_s30 = sadd.s32 4294967295, %s2479_s27   ;;  %s2479_s27 = sphi %s2541_s27, %s2836_s27   ;;  %s2475_s26 = sphi %s2539_s26, %s2835_s26   ;;  %s2471_s25 = sphi %s2537_s25, %s2834_s25   ;;  %s2467_s24 = sphi %s2535_s24, %s2833_s24  }
   0xc   : > { %s221_s29 = sshll.u32 %s2481_s28, 4  ;;  %p2032_p0 = scmp.ge.s32.totalorder %s2479_s27, 1  ;;  %s222_s29 = int_to_ptr.vmem [resolvable:$true] %s221_s29 }
   0xd   : > { %p2805_p1 = scmp.eq.s32.totalorder %s2556_s30, 0  ;;  %p209_p2 = scmp.lt.s32.totalorder %s2479_s27, 3 }
   0xe   : > { %s2482_s9 = smov [#allocation8]   ;;  %s2483_s12 = smov [#allocation11]  }
   0xf   : > { %p2561_p3 = pnand %p2032_p0, %p209_p2  ;;  %s245_s10 = sshll.u32 %s2482_s9, 4  ;;  %s2574_s10 = int_to_ptr.vmem [resolvable:$true] %s245_s10 }
  0x10   : > { %s2576_s13 = sshll.u32 %s2483_s12, 4  ;;  %s2230_s15 = scalar_lea.vmem %s222_s29, 65536  ;;  %s270_s13 = int_to_ptr.vmem [resolvable:$true] %s2576_s13 }
  0x11   : > { %s2811_s8 = scalar_select %p2561_p3, 1, 0 }
  0x12   : > { %p2122_p5 = pneg %p2561_p3  ;;  %p2231_p8 = scmp.ne.s32.totalorder %s222_s29, %s2230_s15 }
  0x13   : > { %p2238_p11 = scmp.lt.s32.totalorder %s222_s29, %s222_s29  ;;  %p2239_p12 = scmp.lt.s32.totalorder %s2230_s15, %s2230_s15 }
  0x14   : > { %p2570_p6 = pnand %p2122_p5, %p2805_p1 }
  0x15   : > { %p2240_p13 = por %p2239_p12, %p2238_p11 }
  0x16   : > { %p2580_p7 = pneg %p2570_p6 }
  0x18   : > { %p2233_p9 = pnand %p2231_p8, %p2580_p7 }
  0x1a   : > { %p2234_p10 = pneg %p2233_p9 }
  0x1c   : > { %p2241_p0 = pnand %p2240_p13, %p2234_p10 }
  0x1e   : > { %2244 = shalt.err (!%p2241_p0)
}
  0x1f   : > { %s2484_s16 = smov 512   ;;  %s2485_s17 = smov 32  }
  0x20   : > { %s2814_s1 = sld [smem:[#allocation20_spill]]  ;;  %s2256_s20 = scalar_lea.vmem %s2574_s10, 16384 }
  0x21   : > { %p2257_p2 = scmp.ne.s32.totalorder %s2574_s10, %s2256_s20  ;;  %p2264_p9 = scmp.lt.s32.totalorder %s2574_s10, %s2574_s10 }
  0x22   : > { %p2265_p10 = scmp.lt.s32.totalorder %s2256_s20, %s2256_s20 }
  0x23   : > { %p2259_p5 = pnand %p2257_p2, %p2580_p7 }
  0x24   : > { %p2266_p11 = por %p2265_p10, %p2264_p9 }
  0x25   : > { %p2260_p8 = pneg %p2259_p5 }
  0x26   : > { %2125 = dma.hbm_to_vmem [thread:$0]  (!%p2570_p6), %s2814_s1, 65536, %s222_s29, [#allocation6], %s2484_s16, %s2484_s16, %s2485_s17  }
  0x27   : > { %p2267_p12 = pnand %p2266_p11, %p2260_p8 }
  0x29   : > { %2270 = shalt.err (!%p2267_p12)
}
  0x2a   : > { %s2486_s21 = smov 256   ;;  %s2487_s22 = smov 16  }
  0x2b   : > { %2131 = dma.hbm_to_vmem [thread:$0]  (!%p2570_p6), %s2800_s3, 16384, %s2574_s10, [#allocation9], %s2486_s21, %s2486_s21, %s2487_s22  }
  0x2c   : > { %s2282_s29 = scalar_lea.vmem %s270_s13, 4096  ;;  %p2290_p5 = scmp.lt.s32.totalorder %s270_s13, %s270_s13 }
  0x2d   : > { %p2283_p13 = scmp.ne.s32.totalorder %s270_s13, %s2282_s29  ;;  %p2291_p8 = scmp.lt.s32.totalorder %s2282_s29, %s2282_s29 }
  0x2f   : > { %p2285_p0 = pnand %p2283_p13, %p2580_p7  ;;  %p2292_p9 = por %p2291_p8, %p2290_p5 }
  0x31   : > { %p2286_p2 = pneg %p2285_p0 }
  0x33   : > { %p2293_p10 = pnand %p2292_p9, %p2286_p2 }
  0x35   : > { %2296 = shalt.err (!%p2293_p10)
}
  0x36   : > { %s2488_s9 = smov 128   ;;  %s2489_s12 = smov 8  }
  0x37   : > { %2137 = dma.hbm_to_vmem [thread:$0]  (!%p2570_p6), %s2802_s5, 4096, %s270_s13, [#allocation12], %s2488_s9, %s2488_s9, %s2489_s12  }
  0x38   : > { %s2490_s10 = smov [#allocation7]   ;;  %s2491_s18 = smov [#allocation10]  }
  0x39   : > { %s235_s17 = sshll.u32 %s2490_s10, 4  ;;  %s259_s19 = sshll.u32 %s2491_s18, 4  ;;  %s236_s17 = int_to_ptr.vmem [resolvable:$true] %s235_s17  ;;  %s260_s19 = int_to_ptr.vmem [resolvable:$true] %s259_s19 }
  0x3a   : > { %s2308_s20 = scalar_lea.vmem %s236_s17, 64  ;;  %p2316_p0 = scmp.lt.s32.totalorder %s236_s17, %s236_s17 }
  0x3b   : > { %p2309_p11 = scmp.ne.s32.totalorder %s236_s17, %s2308_s20  ;;  %p2317_p2 = scmp.lt.s32.totalorder %s2308_s20, %s2308_s20 }
  0x3d   : > { %p2311_p12 = pnand %p2309_p11, %p2580_p7  ;;  %p2318_p5 = por %p2317_p2, %p2316_p0 }
  0x3f   : > { %p2312_p13 = pneg %p2311_p12 }
  0x41   : > { %p2319_p8 = pnand %p2318_p5, %p2312_p13 }
  0x43   : > { %2322 = shalt.err (!%p2319_p8)
}
  0x44   : > { %s2815_s2 = sld [smem:[#allocation21_spill]]  ;;  %s2334_s13 = scalar_lea.vmem %s260_s19, 32 }
  0x45   : > { %p2335_p9 = scmp.ne.s32.totalorder %s260_s19, %s2334_s13  ;;  %p2342_p11 = scmp.lt.s32.totalorder %s260_s19, %s260_s19 }
  0x46   : > { %p2343_p12 = scmp.lt.s32.totalorder %s2334_s13, %s2334_s13 }
  0x47   : > { %p2337_p10 = pnand %p2335_p9, %p2580_p7 }
  0x48   : > { %p2344_p1 = por %p2343_p12, %p2342_p11 }
  0x49   : > { %p2338_p4 = pneg %p2337_p10 }
  0x4a   : > { %2128 = dma.hbm_to_vmem [thread:$0]  (!%p2570_p6), %s2815_s2, 64, %s236_s17, [#allocation6]  }
  0x4b   : > { %p2345_p3 = pnand %p2344_p1, %p2338_p4 }
  0x4d   : > { %2348 = shalt.err (!%p2345_p3)
}
  0x4e   : > { %2134 = dma.hbm_to_vmem [thread:$0]  (!%p2570_p6), %s2801_s4, 32, %s260_s19, [#allocation9]  }
  0x4f   : > { %s2492_s29 = smov [#allocation13]  }
  0x50   : > { %s283_s9 = sshll.u32 %s2492_s29, 4  ;;  %s284_s9 = int_to_ptr.vmem [resolvable:$true] %s283_s9 }
  0x51   : > { %s2360_s12 = scalar_lea.vmem %s284_s9, 16  ;;  %s2367_s15 = scalar_lea.vmem %s284_s9, 32 }
  0x52   : > { %p2361_p13 = scmp.ne.s32.totalorder %s284_s9, %s2360_s12  ;;  %p2368_p5 = scmp.lt.s32.totalorder %s284_s9, %s284_s9 }
  0x53   : > { %p2369_p8 = scmp.lt.s32.totalorder %s2367_s15, %s2360_s12 }
  0x54   : > { %p2363_p0 = pnand %p2361_p13, %p2580_p7 }
  0x55   : > { %p2370_p1 = por %p2369_p8, %p2368_p5 }
  0x56   : > { %p2364_p2 = pneg %p2363_p0 }
  0x58   : > { %p2371_p3 = pnand %p2370_p1, %p2364_p2 }
  0x5a   : > { %2374 = shalt.err (!%p2371_p3)
}
  0x5b   : > { %2140 = dma.hbm_to_vmem [thread:$0]  (!%p2570_p6), %s2803_s6, 16, %s284_s9, [#allocation12]  }
  0x5c   : > { %s2031_s14 = sadd.s32 4294967294, %s2479_s27   ;;  %s2634_s11 = sadd.s32 1, %s2479_s27  }
  0x5d   : > { %s30_s17 = ssub.s32 %s2479_s27, %s2634_s11  ;;  %s33_s18 = sadd.s32 1, %s2475_s26 }
  0x5e   : > { %p31_p4 = scmp.eq.s32.totalorder %s30_s17, 0  ;;  %p40_p7 = scmp.ne.s32.totalorder %s2475_s26, %s2471_s25 }
  0x5f   : > { %p41_p9 = scmp.eq.s32.totalorder %s2479_s27, 0  ;;  %p46_p10 = scmp.ne.s32.totalorder %s2471_s25, %s2467_s24 }
  0x60   : > { %s2645_s19 = scalar_select %p31_p4, %s2475_s26, %s33_s18  }
  0x61   : > { %p2647_p11 = por %p41_p9, %p40_p7  ;;  %p2817_p12 = scmp.eq.s32.totalorder %s2556_s30, 0 }
  0x62   : > { %p196_p13 = scmp.eq.s32.totalorder %s2556_s30, 1  ;;  %p202_p0 = scmp.eq.s32.totalorder %s2031_s14, 1 }
  0x63   : > { %p2653_p6 = por %p2817_p12, %p46_p10  ;;  %p2155_p2 = scmp.lt.s32.totalorder %s2479_s27, 2 }
  0x64   : > { %s294_s22 = sand.u32 1, %s2475_s26   ;;  %p2660_p5 = por %p196_p13, %p40_p7 }
  0x65   : > { %s2818_s21 = scalar_select %p2653_p6, 1, 0 }
  0x66   : > { %s2819_s13 = scalar_select %p2660_p5, 1, 0 }
  0x67   : > { %p2664_p8 = por %p202_p0, %p46_p10  ;;  %s2040_s28 = sshll.u32 %s294_s22, 6 }
  0x68   : > { %s2058_s29 = sshll.u32 %s2479_s27, 10  ;;  %s298_s16 = scalar_lea.vmem [#allocation2], %s2040_s28 }
  0x69   : > { %s2820_s23 = scalar_select %p2664_p8, 1, 0 }
  0x6a   : > { %s2672_s15 = scalar_lea.hbm %s2797_s0, %s2058_s29  ;;  %s306_s10 = sshll.u32 %s298_s16, 4  ;;  %s307_s10 = int_to_ptr.vmem [resolvable:$true] %s306_s10 }
  0x6b   : > { %p2676_p1 = pnand %p2155_p2, %p2647_p11  ;;  %s295_s17 = scalar_lea.sflag [#allocation3], %s294_s22 }
  0x6c   : > { %s2375_s18 = scalar_lea.hbm %s2672_s15, 1024  ;;  %s2380_s12 = scalar_lea.hbm %s2797_s0, 2048 }
  0x6d   : > { %p2376_p3 = scmp.ne.s32.totalorder %s2672_s15, %s2375_s18  ;;  %p2377_p4 = pneg %p2676_p1 }
  0x6e   : > { %p2381_p10 = scmp.lt.s32.totalorder %s2672_s15, %s2797_s0  ;;  %p2382_p11 = scmp.lt.s32.totalorder %s2380_s12, %s2375_s18 }
  0x6f   : > { %p2378_p7 = pnand %p2377_p4, %p2376_p3 }
  0x70   : > { %p2383_p12 = por %p2382_p11, %p2381_p10 }
  0x71   : > { %p2379_p9 = pneg %p2378_p7 }
  0x73   : > { %p2384_p13 = pnand %p2383_p12, %p2379_p9 }
  0x75   : > { %2387 = shalt.err (!%p2384_p13)
}
  0x76   : > { %s2388_s20 = scalar_lea.vmem %s307_s10, 1024  ;;  %s2493_s22 = smov [#allocation2]  }
  0x77   : > { %p2389_p0 = scmp.ne.s32.totalorder %s307_s10, %s2388_s20  ;;  %s2393_s1 = sshll.u32 %s2493_s22, 4  ;;  %s2394_s1 = int_to_ptr.vmem [resolvable:$false] %s2393_s1 }
  0x78   : > { %s2395_s2 = scalar_lea.vmem %s2394_s1, 2048  ;;  %p2396_p3 = scmp.lt.s32.totalorder %s307_s10, %s2394_s1 }
  0x79   : > { %p2391_p2 = pnand %p2389_p0, %p2377_p4  ;;  %p2397_p7 = scmp.lt.s32.totalorder %s2395_s2, %s2388_s20 }
  0x7b   : > { %p2392_p8 = pneg %p2391_p2  ;;  %p2398_p5 = por %p2397_p7, %p2396_p3 }
  0x7d   : > { %p2399_p6 = pnand %p2398_p5, %p2392_p8 }
  0x7f   : > { %2402 = shalt.err (!%p2399_p6)
}
  0x80   : > { %2144 = dma.hbm_to_vmem [thread:$0]  (!%p2676_p1), %s2672_s15, 1024, %s307_s10, %s295_s17  }
  0x81   : > { %p2822_p9 = scmp.ne.s32.totalorder %s2811_s8, 0 }
  0x82   : > { %s2697_s18 = sand.u32 (!%p2822_p9), 1, %s2471_s25   ;;  %p2823_p4 = scmp.ne.s32.totalorder (!%p2822_p9), %s2818_s21, 0 }
  0x83   : > { %315 = sbr.rel (%p2822_p9) target bundleno = 1057 (0x421), region = 48  ;;  %s2044_s29 = sshll.u32 (!%p2822_p9), %s2697_s18, 6 }
  0x84   : > { %s318_s9 = scalar_lea.sflag (!%p2822_p9), [#allocation3], %s2697_s18  ;;  %s2701_s1 = scalar_lea.vmem (!%p2822_p9), [#allocation2], %s2044_s29 }
  0x88   : > { %2446 = dma.done.wait (%p2823_p4), %s318_s9, 1024  }
  0x89   : > { %2448 = vsyncadd (%p2823_p4), %s318_s9, 4294966272  ;;  %p2824_p6 = scmp.eq.s32.totalorder %s2556_s30, 0 }
  0x8b   : > { %2450 = dma.done.wait (%p2824_p6), [#allocation6], 65600   ;;  %p2825_p5 = pmov %p2824_p6 }
  0x8d   : > { %2452 = vsyncadd (%p2825_p5), [#allocation6], 4294901696  ;;  %p2826_p8 = pmov %p2825_p5 }
  0x8e   : > { %p2827_p1 = pmov %p2825_p5 }
  0x8f   : > { %2454 = dma.done.wait (%p2826_p8), [#allocation9], 16416  }
  0x90   : > { %2456 = vsyncadd (%p2827_p1), [#allocation9], 4294950880  ;;  %p2828_p10 = pmov %p2827_p1 }
  0x91   : > { %p2829_p11 = pmov %p2827_p1 }
  0x92   : > { %2458 = dma.done.wait (%p2828_p10), [#allocation12], 4112  }
  0x93   : > { %2460 = vsyncadd (%p2829_p11), [#allocation12], 4294963184  ;;  %v445_v0 = vld [vmem:[#allocation5 + $0x1e8] sm:$0xff]  ;;  %v444_v2 = vld [vmem:[#allocation5 + $0x1e0] sm:$0xff]  ;;  %s2051_s2 = sshll.u32 %s2697_s18, 3  ;;  %s2055_s8 = sshll.u32 %s2556_s30, 7 }
  0x94   : > { %v573_v1 = vld [vmem:[#allocation5 + $0x5e8] sm:$0xff]  ;;  %918 = vmatprep.subr.mxu0 %v445_v0  ;;  %v572_v3 = vld [vmem:[#allocation5 + $0x5e0] sm:$0xff]  ;;  %s375_s21 = scalar_lea.vmem [#allocation14], %s2051_s2  ;;  %s2760_s17 = scalar_lea.hbm %s2804_s7, %s2055_s8 }
  0x95   : > { %989 = vmatprep.subr.mxu1 %v573_v1  ;;  %v441_v4 = vld [vmem:[#allocation5 + $0x1c8] sm:$0xff]  ;;  %919 = vmatpush1.msra.mxu0 %v444_v2  ;;  %v440_v6 = vld [vmem:[#allocation5 + $0x1c0] sm:$0xff]  ;;  %s1904_s15 = sshll.u32 %s375_s21, 4  ;;  %s1891_s12 = scalar_lea.sflag [#allocation4], %s2697_s18  ;;  %s1905_s15 = int_to_ptr.vmem [resolvable:$true] %s1904_s15 }
  0x96   : > { %v569_v5 = vld [vmem:[#allocation5 + $0x5c8] sm:$0xff]  ;;  %990 = vmatpush1.msra.mxu1 %v572_v3  ;;  %v568_v7 = vld [vmem:[#allocation5 + $0x5c0] sm:$0xff]  ;;  %920 = vmatprep.subr.mxu0 %v441_v4  ;;  %s2403_s28 = scalar_lea.vmem %s1905_s15, 128  ;;  %p2830_p13 = scmp.ne.s32.totalorder %s2819_s13, 0 }
  0x97   : > { %v437_v8 = vld [vmem:[#allocation5 + $0x1a8] sm:$0xff]  ;;  %991 = vmatprep.subr.mxu1 %v569_v5  ;;  %v436_v10 = vld [vmem:[#allocation5 + $0x1a0] sm:$0xff]  ;;  %921 = vmatpush1.msra.mxu0 %v440_v6  ;;  %p2404_p12 = scmp.ne.s32.totalorder %s1905_s15, %s2403_s28  ;;  %s2494_s16 = smov [#allocation14]  }
  0x98   : > { %v565_v9 = vld [vmem:[#allocation5 + $0x5a8] sm:$0xff]  ;;  %v564_v11 = vld [vmem:[#allocation5 + $0x5a0] sm:$0xff]  ;;  %992 = vmatpush1.msra.mxu1 %v568_v7  ;;  %922 = vmatprep.subr.mxu0 %v437_v8  ;;  %s2407_s20 = sshll.u32 %s2494_s16, 4  ;;  %s2408_s20 = int_to_ptr.vmem [resolvable:$false] %s2407_s20 }
  0x99   : > { %v433_v12 = vld [vmem:[#allocation5 + $0x188] sm:$0xff]  ;;  %993 = vmatprep.subr.mxu1 %v565_v9  ;;  %v432_v14 = vld [vmem:[#allocation5 + $0x180] sm:$0xff]  ;;  %923 = vmatpush1.msra.mxu0 %v436_v10  ;;  %p2405_p0 = pnand %p2404_p12, %p2830_p13  ;;  %s2409_s30 = scalar_lea.vmem %s2408_s20, 256 }
  0x9a   : > { %v561_v13 = vld [vmem:[#allocation5 + $0x588] sm:$0xff]  ;;  %v560_v15 = vld [vmem:[#allocation5 + $0x580] sm:$0xff]  ;;  %994 = vmatpush1.msra.mxu1 %v564_v11  ;;  %924 = vmatprep.subr.mxu0 %v433_v12  ;;  %p2410_p3 = scmp.lt.s32.totalorder %s1905_s15, %s2408_s20  ;;  %p2411_p7 = scmp.lt.s32.totalorder %s2409_s30, %s2403_s28 }
  0x9b   : > { %v429_v16 = vld [vmem:[#allocation5 + $0x168] sm:$0xff]  ;;  %995 = vmatprep.subr.mxu1 %v561_v13  ;;  %v428_v18 = vld [vmem:[#allocation5 + $0x160] sm:$0xff]  ;;  %925 = vmatpush1.msra.mxu0 %v432_v14  ;;  %p2406_p2 = pneg %p2405_p0 }
  0x9c   : > { %v557_v17 = vld [vmem:[#allocation5 + $0x568] sm:$0xff]  ;;  %v556_v19 = vld [vmem:[#allocation5 + $0x560] sm:$0xff]  ;;  %996 = vmatpush1.msra.mxu1 %v560_v15  ;;  %926 = vmatprep.subr.mxu0 %v429_v16  ;;  %p2412_p9 = por %p2411_p7, %p2410_p3 }
  0x9d   : > { %v425_v20 = vld [vmem:[#allocation5 + $0x148] sm:$0xff]  ;;  %997 = vmatprep.subr.mxu1 %v557_v17  ;;  %v424_v22 = vld [vmem:[#allocation5 + $0x140] sm:$0xff]  ;;  %927 = vmatpush1.msra.mxu0 %v428_v18 }
  0x9e   : > { %v553_v21 = vld [vmem:[#allocation5 + $0x548] sm:$0xff]  ;;  %v552_v23 = vld [vmem:[#allocation5 + $0x540] sm:$0xff]  ;;  %998 = vmatpush1.msra.mxu1 %v556_v19  ;;  %928 = vmatprep.subr.mxu0 %v425_v20  ;;  %p2413_p4 = pnand %p2412_p9, %p2406_p2 }
  0x9f   : > { %v421_v24 = vld [vmem:[#allocation5 + $0x128] sm:$0xff]  ;;  %999 = vmatprep.subr.mxu1 %v553_v21  ;;  %v420_v26 = vld [vmem:[#allocation5 + $0x120] sm:$0xff]  ;;  %929 = vmatpush1.msra.mxu0 %v424_v22 }
  0xa0   : > { %v549_v25 = vld [vmem:[#allocation5 + $0x528] sm:$0xff]  ;;  %v548_v27 = vld [vmem:[#allocation5 + $0x520] sm:$0xff]  ;;  %1000 = vmatpush1.msra.mxu1 %v552_v23  ;;  %930 = vmatprep.subr.mxu0 %v421_v24 }
  0xa1   : > { %v417_v28 = vld [vmem:[#allocation5 + $0x108] sm:$0xff]  ;;  %1001 = vmatprep.subr.mxu1 %v549_v25  ;;  %v416_v30 = vld [vmem:[#allocation5 + $0x100] sm:$0xff]  ;;  %931 = vmatpush1.msra.mxu0 %v420_v26 }
  0xa2   : > { %v545_v29 = vld [vmem:[#allocation5 + $0x508] sm:$0xff]  ;;  %v544_v31 = vld [vmem:[#allocation5 + $0x500] sm:$0xff]  ;;  %1002 = vmatpush1.msra.mxu1 %v548_v27  ;;  %932 = vmatprep.subr.mxu0 %v417_v28 }
  0xa3   : > { %v413_v32 = vld [vmem:[#allocation5 + $0xe8] sm:$0xff]  ;;  %1003 = vmatprep.subr.mxu1 %v545_v29  ;;  %v412_v34 = vld [vmem:[#allocation5 + $0xe0] sm:$0xff]  ;;  %933 = vmatpush1.msra.mxu0 %v416_v30 }
  0xa4   : > { %v541_v33 = vld [vmem:[#allocation5 + $0x4e8] sm:$0xff]  ;;  %v540_v35 = vld [vmem:[#allocation5 + $0x4e0] sm:$0xff]  ;;  %1004 = vmatpush1.msra.mxu1 %v544_v31  ;;  %934 = vmatprep.subr.mxu0 %v413_v32 }
  0xa5   : > { %v409_v36 = vld [vmem:[#allocation5 + $0xc8] sm:$0xff]  ;;  %1005 = vmatprep.subr.mxu1 %v541_v33  ;;  %v408_v38 = vld [vmem:[#allocation5 + $0xc0] sm:$0xff]  ;;  %935 = vmatpush1.msra.mxu0 %v412_v34 }
  0xa6   : > { %v537_v37 = vld [vmem:[#allocation5 + $0x4c8] sm:$0xff]  ;;  %v536_v39 = vld [vmem:[#allocation5 + $0x4c0] sm:$0xff]  ;;  %1006 = vmatpush1.msra.mxu1 %v540_v35  ;;  %936 = vmatprep.subr.mxu0 %v409_v36 }
  0xa7   : > { %v405_v40 = vld [vmem:[#allocation5 + $0xa8] sm:$0xff]  ;;  %1007 = vmatprep.subr.mxu1 %v537_v37  ;;  %v404_v42 = vld [vmem:[#allocation5 + $0xa0] sm:$0xff]  ;;  %937 = vmatpush1.msra.mxu0 %v408_v38 }
  0xa8   : > { %v533_v41 = vld [vmem:[#allocation5 + $0x4a8] sm:$0xff]  ;;  %v532_v43 = vld [vmem:[#allocation5 + $0x4a0] sm:$0xff]  ;;  %1008 = vmatpush1.msra.mxu1 %v536_v39  ;;  %938 = vmatprep.subr.mxu0 %v405_v40 }
  0xa9   : > { %v401_v44 = vld [vmem:[#allocation5 + $0x88] sm:$0xff]  ;;  %1009 = vmatprep.subr.mxu1 %v533_v41  ;;  %v400_v46 = vld [vmem:[#allocation5 + $0x80] sm:$0xff]  ;;  %939 = vmatpush1.msra.mxu0 %v404_v42 }
  0xaa   : > { %v529_v45 = vld [vmem:[#allocation5 + $0x488] sm:$0xff]  ;;  %v528_v47 = vld [vmem:[#allocation5 + $0x480] sm:$0xff]  ;;  %1010 = vmatpush1.msra.mxu1 %v532_v43  ;;  %940 = vmatprep.subr.mxu0 %v401_v44 }
  0xab   : > { %v397_v48 = vld [vmem:[#allocation5 + $0x68] sm:$0xff]  ;;  %1011 = vmatprep.subr.mxu1 %v529_v45  ;;  %v396_v50 = vld [vmem:[#allocation5 + $0x60] sm:$0xff]  ;;  %941 = vmatpush1.msra.mxu0 %v400_v46 }
  0xac   : > { %v525_v49 = vld [vmem:[#allocation5 + $0x468] sm:$0xff]  ;;  %v524_v51 = vld [vmem:[#allocation5 + $0x460] sm:$0xff]  ;;  %1012 = vmatpush1.msra.mxu1 %v528_v47  ;;  %942 = vmatprep.subr.mxu0 %v397_v48 }
  0xad   : > { %v393_v52 = vld [vmem:[#allocation5 + $0x48] sm:$0xff]  ;;  %1013 = vmatprep.subr.mxu1 %v525_v49  ;;  %v392_v54 = vld [vmem:[#allocation5 + $0x40] sm:$0xff]  ;;  %943 = vmatpush1.msra.mxu0 %v396_v50 }
  0xae   : > { %v521_v53 = vld [vmem:[#allocation5 + $0x448] sm:$0xff]  ;;  %v520_v55 = vld [vmem:[#allocation5 + $0x440] sm:$0xff]  ;;  %1014 = vmatpush1.msra.mxu1 %v524_v51  ;;  %944 = vmatprep.subr.mxu0 %v393_v52 }
  0xaf   : > { %v389_v56 = vld [vmem:[#allocation5 + $0x28] sm:$0xff]  ;;  %1015 = vmatprep.subr.mxu1 %v521_v53  ;;  %v388_v58 = vld [vmem:[#allocation5 + $0x20] sm:$0xff]  ;;  %945 = vmatpush1.msra.mxu0 %v392_v54 }
  0xb0   : > { %v517_v57 = vld [vmem:[#allocation5 + $0x428] sm:$0xff]  ;;  %v516_v59 = vld [vmem:[#allocation5 + $0x420] sm:$0xff]  ;;  %1016 = vmatpush1.msra.mxu1 %v520_v55  ;;  %946 = vmatprep.subr.mxu0 %v389_v56 }
  0xb1   : > { %v385_v60 = vld [vmem:[#allocation5 + $0x8] sm:$0xff]  ;;  %1017 = vmatprep.subr.mxu1 %v517_v57  ;;  %v384_v62 = vld [vmem:[#allocation5] sm:$0xff]  ;;  %947 = vmatpush1.msra.mxu0 %v388_v58 }
  0xb2   : > { %v513_v61 = vld [vmem:[#allocation5 + $0x408] sm:$0xff]  ;;  %v512_v63 = vld [vmem:[#allocation5 + $0x400] sm:$0xff]  ;;  %1018 = vmatpush1.msra.mxu1 %v516_v59  ;;  %948 = vmatprep.subr.mxu0 %v385_v60 }
  0xb3   : > { %v509_v0 = vld [vmem:[#allocation5 + $0x3e8] sm:$0xff]  ;;  %1019 = vmatprep.subr.mxu1 %v513_v61  ;;  %v508_v2 = vld [vmem:[#allocation5 + $0x3e0] sm:$0xff]  ;;  %949 = vmatpush1.msra.mxu0 %v384_v62 }
  0xb4   : > { %v637_v1 = vld [vmem:[#allocation5 + $0x7e8] sm:$0xff]  ;;  %v636_v3 = vld [vmem:[#allocation5 + $0x7e0] sm:$0xff]  ;;  %1020 = vmatpush1.msra.mxu1 %v512_v63  ;;  %950 = vmatprep.subr.mxu0 %v509_v0 }
  0xb5   : > { %v505_v4 = vld [vmem:[#allocation5 + $0x3c8] sm:$0xff]  ;;  %1021 = vmatprep.subr.mxu1 %v637_v1  ;;  %v504_v6 = vld [vmem:[#allocation5 + $0x3c0] sm:$0xff]  ;;  %951 = vmatpush2.msra.mxu0 %v508_v2  ;;  %v379_v2 = vld [vmem:[%s2701_s1 + $0x18] sm:$0xff] }
  0xb6   : > { %v633_v5 = vld [vmem:[#allocation5 + $0x7c8] sm:$0xff]  ;;  %v632_v7 = vld [vmem:[#allocation5 + $0x7c0] sm:$0xff]  ;;  %1022 = vmatpush2.msra.mxu1 %v636_v3  ;;  %952 = vmatprep.subr.mxu0 %v505_v4 }
  0xb7   : > { %v501_v8 = vld [vmem:[#allocation5 + $0x3a8] sm:$0xff]  ;;  %1023 = vmatprep.subr.mxu1 %v633_v5  ;;  %v500_v10 = vld [vmem:[#allocation5 + $0x3a0] sm:$0xff]  ;;  %953 = vmatpush2.msra.mxu0 %v504_v6  ;;  %v378_v5 = vld [vmem:[%s2701_s1 + $0x10] sm:$0xff] }
  0xb8   : > { %v629_v9 = vld [vmem:[#allocation5 + $0x7a8] sm:$0xff]  ;;  %v628_v11 = vld [vmem:[#allocation5 + $0x7a0] sm:$0xff]  ;;  %1024 = vmatpush2.msra.mxu1 %v632_v7  ;;  %954 = vmatprep.subr.mxu0 %v501_v8 }
  0xb9   : > { %v497_v12 = vld [vmem:[#allocation5 + $0x388] sm:$0xff]  ;;  %1025 = vmatprep.subr.mxu1 %v629_v9  ;;  %v496_v14 = vld [vmem:[#allocation5 + $0x380] sm:$0xff]  ;;  %955 = vmatpush2.msra.mxu0 %v500_v10 }
  0xba   : > { %v625_v13 = vld [vmem:[#allocation5 + $0x788] sm:$0xff]  ;;  %v624_v15 = vld [vmem:[#allocation5 + $0x780] sm:$0xff]  ;;  %1026 = vmatpush2.msra.mxu1 %v628_v11  ;;  %956 = vmatprep.subr.mxu0 %v497_v12 }
  0xbb   : > { %v493_v16 = vld [vmem:[#allocation5 + $0x368] sm:$0xff]  ;;  %1027 = vmatprep.subr.mxu1 %v625_v13  ;;  %v492_v18 = vld [vmem:[#allocation5 + $0x360] sm:$0xff]  ;;  %957 = vmatpush2.msra.mxu0 %v496_v14 }
  0xbc   : > { %v621_v17 = vld [vmem:[#allocation5 + $0x768] sm:$0xff]  ;;  %v620_v19 = vld [vmem:[#allocation5 + $0x760] sm:$0xff]  ;;  %1028 = vmatpush2.msra.mxu1 %v624_v15  ;;  %958 = vmatprep.subr.mxu0 %v493_v16 }
  0xbd   : > { %v489_v20 = vld [vmem:[#allocation5 + $0x348] sm:$0xff]  ;;  %1029 = vmatprep.subr.mxu1 %v621_v17  ;;  %v488_v22 = vld [vmem:[#allocation5 + $0x340] sm:$0xff]  ;;  %959 = vmatpush2.msra.mxu0 %v492_v18 }
  0xbe   : > { %v617_v21 = vld [vmem:[#allocation5 + $0x748] sm:$0xff]  ;;  %v616_v23 = vld [vmem:[#allocation5 + $0x740] sm:$0xff]  ;;  %1030 = vmatpush2.msra.mxu1 %v620_v19  ;;  %960 = vmatprep.subr.mxu0 %v489_v20 }
  0xbf   : > { %v485_v24 = vld [vmem:[#allocation5 + $0x328] sm:$0xff]  ;;  %1031 = vmatprep.subr.mxu1 %v617_v21  ;;  %v484_v26 = vld [vmem:[#allocation5 + $0x320] sm:$0xff]  ;;  %961 = vmatpush2.msra.mxu0 %v488_v22 }
  0xc0   : > { %v613_v25 = vld [vmem:[#allocation5 + $0x728] sm:$0xff]  ;;  %v612_v27 = vld [vmem:[#allocation5 + $0x720] sm:$0xff]  ;;  %1032 = vmatpush2.msra.mxu1 %v616_v23  ;;  %962 = vmatprep.subr.mxu0 %v485_v24 }
  0xc1   : > { %v481_v28 = vld [vmem:[#allocation5 + $0x308] sm:$0xff]  ;;  %1033 = vmatprep.subr.mxu1 %v613_v25  ;;  %v480_v30 = vld [vmem:[#allocation5 + $0x300] sm:$0xff]  ;;  %963 = vmatpush2.msra.mxu0 %v484_v26 }
  0xc2   : > { %v609_v29 = vld [vmem:[#allocation5 + $0x708] sm:$0xff]  ;;  %v608_v31 = vld [vmem:[#allocation5 + $0x700] sm:$0xff]  ;;  %1034 = vmatpush2.msra.mxu1 %v612_v27  ;;  %964 = vmatprep.subr.mxu0 %v481_v28 }
  0xc3   : > { %v477_v32 = vld [vmem:[#allocation5 + $0x2e8] sm:$0xff]  ;;  %1035 = vmatprep.subr.mxu1 %v609_v29  ;;  %v476_v34 = vld [vmem:[#allocation5 + $0x2e0] sm:$0xff]  ;;  %965 = vmatpush2.msra.mxu0 %v480_v30 }
  0xc4   : > { %v605_v33 = vld [vmem:[#allocation5 + $0x6e8] sm:$0xff]  ;;  %v604_v35 = vld [vmem:[#allocation5 + $0x6e0] sm:$0xff]  ;;  %1036 = vmatpush2.msra.mxu1 %v608_v31  ;;  %966 = vmatprep.subr.mxu0 %v477_v32 }
  0xc5   : > { %v473_v36 = vld [vmem:[#allocation5 + $0x2c8] sm:$0xff]  ;;  %1037 = vmatprep.subr.mxu1 %v605_v33  ;;  %v472_v38 = vld [vmem:[#allocation5 + $0x2c0] sm:$0xff]  ;;  %967 = vmatpush2.msra.mxu0 %v476_v34 }
  0xc6   : > { %v601_v37 = vld [vmem:[#allocation5 + $0x6c8] sm:$0xff]  ;;  %v600_v39 = vld [vmem:[#allocation5 + $0x6c0] sm:$0xff]  ;;  %1038 = vmatpush2.msra.mxu1 %v604_v35  ;;  %968 = vmatprep.subr.mxu0 %v473_v36 }
  0xc7   : > { %v469_v40 = vld [vmem:[#allocation5 + $0x2a8] sm:$0xff]  ;;  %1039 = vmatprep.subr.mxu1 %v601_v37  ;;  %v468_v42 = vld [vmem:[#allocation5 + $0x2a0] sm:$0xff]  ;;  %969 = vmatpush2.msra.mxu0 %v472_v38 }
  0xc8   : > { %v597_v41 = vld [vmem:[#allocation5 + $0x6a8] sm:$0xff]  ;;  %v596_v43 = vld [vmem:[#allocation5 + $0x6a0] sm:$0xff]  ;;  %1040 = vmatpush2.msra.mxu1 %v600_v39  ;;  %970 = vmatprep.subr.mxu0 %v469_v40 }
  0xc9   : > { %v465_v44 = vld [vmem:[#allocation5 + $0x288] sm:$0xff]  ;;  %1041 = vmatprep.subr.mxu1 %v597_v41  ;;  %v464_v46 = vld [vmem:[#allocation5 + $0x280] sm:$0xff]  ;;  %971 = vmatpush2.msra.mxu0 %v468_v42 }
  0xca   : > { %v593_v45 = vld [vmem:[#allocation5 + $0x688] sm:$0xff]  ;;  %v592_v47 = vld [vmem:[#allocation5 + $0x680] sm:$0xff]  ;;  %1042 = vmatpush2.msra.mxu1 %v596_v43  ;;  %972 = vmatprep.subr.mxu0 %v465_v44 }
  0xcb   : > { %v461_v48 = vld [vmem:[#allocation5 + $0x268] sm:$0xff]  ;;  %1043 = vmatprep.subr.mxu1 %v593_v45  ;;  %v460_v50 = vld [vmem:[#allocation5 + $0x260] sm:$0xff]  ;;  %973 = vmatpush2.msra.mxu0 %v464_v46 }
  0xcc   : > { %v589_v49 = vld [vmem:[#allocation5 + $0x668] sm:$0xff]  ;;  %v588_v51 = vld [vmem:[#allocation5 + $0x660] sm:$0xff]  ;;  %1044 = vmatpush2.msra.mxu1 %v592_v47  ;;  %974 = vmatprep.subr.mxu0 %v461_v48 }
  0xcd   : > { %v457_v52 = vld [vmem:[#allocation5 + $0x248] sm:$0xff]  ;;  %1045 = vmatprep.subr.mxu1 %v589_v49  ;;  %v456_v54 = vld [vmem:[#allocation5 + $0x240] sm:$0xff]  ;;  %975 = vmatpush2.msra.mxu0 %v460_v50 }
  0xce   : > { %v585_v53 = vld [vmem:[#allocation5 + $0x648] sm:$0xff]  ;;  %v584_v55 = vld [vmem:[#allocation5 + $0x640] sm:$0xff]  ;;  %1046 = vmatpush2.msra.mxu1 %v588_v51  ;;  %976 = vmatprep.subr.mxu0 %v457_v52 }
  0xcf   : > { %v453_v56 = vld [vmem:[#allocation5 + $0x228] sm:$0xff]  ;;  %1047 = vmatprep.subr.mxu1 %v585_v53  ;;  %v452_v58 = vld [vmem:[#allocation5 + $0x220] sm:$0xff]  ;;  %977 = vmatpush2.msra.mxu0 %v456_v54 }
  0xd0   : > { %v581_v57 = vld [vmem:[#allocation5 + $0x628] sm:$0xff]  ;;  %v580_v59 = vld [vmem:[#allocation5 + $0x620] sm:$0xff]  ;;  %1048 = vmatpush2.msra.mxu1 %v584_v55  ;;  %978 = vmatprep.subr.mxu0 %v453_v56 }
  0xd1   : > { %v449_v60 = vld [vmem:[#allocation5 + $0x208] sm:$0xff]  ;;  %1049 = vmatprep.subr.mxu1 %v581_v57  ;;  %v448_v62 = vld [vmem:[#allocation5 + $0x200] sm:$0xff]  ;;  %979 = vmatpush2.msra.mxu0 %v452_v58 }
  0xd2   : > { %v577_v61 = vld [vmem:[#allocation5 + $0x608] sm:$0xff]  ;;  %1050 = vmatpush2.msra.mxu1 %v580_v59  ;;  %v576_v0 = vld [vmem:[#allocation5 + $0x600] sm:$0xff]  ;;  %980 = vmatprep.subr.mxu0 %v449_v60 }
  0xd3   : > { %v377_v63 = vld [vmem:[%s2701_s1 + $0x8] sm:$0xff]  ;;  %v376_v1 = vld [vmem:[%s2701_s1] sm:$0xff]  ;;  %1051 = vmatprep.subr.mxu1 %v577_v61  ;;  %981 = vmatpush2.msra.mxu0 %v448_v62 }
  0xd4   : > { %v701_v3 = vld [vmem:[#allocation5 + $0x9e8] sm:$0xff]  ;;  %982 = vmatprep.mubr.f32.mxu0 %v377_v63  ;;  %1052 = vmatpush2.msra.mxu1 %v576_v0  ;;  %v700_v6 = vld [vmem:[#allocation5 + $0x9e0] sm:$0xff] }
  0xd5   : > { %v829_v4 = vld [vmem:[#allocation5 + $0xde8] sm:$0xff]  ;;  %983 = vmatmul.mubr.f32.vlgmr.msra.gmra.mxu0 %v376_v1  ;;  %v828_v7 = vld [vmem:[#allocation5 + $0xde0] sm:$0xff]  ;;  %1053 = vmatprep.mubr.f32.mxu1 %v379_v2 }
  0xd6   : > { %1060 = vmatprep.subr.mxu0 %v701_v3  ;;  %v697_v8 = vld [vmem:[#allocation5 + $0x9c8] sm:$0xff]  ;;  %1131 = vmatprep.subr.mxu1 %v829_v4  ;;  %v696_v10 = vld [vmem:[#allocation5 + $0x9c0] sm:$0xff] }
  0xd7   : > { %v825_v9 = vld [vmem:[#allocation5 + $0xdc8] sm:$0xff]  ;;  %1054 = vmatmul.mubr.f32.vlgmr.msra.gmra.mxu1 %v378_v5  ;;  %v824_v11 = vld [vmem:[#allocation5 + $0xdc0] sm:$0xff]  ;;  %1061 = vmatpush1.msra.mxu0 %v700_v6 }
  0xd8   : > { %1132 = vmatpush1.msra.mxu1 %v828_v7  ;;  %v693_v12 = vld [vmem:[#allocation5 + $0x9a8] sm:$0xff]  ;;  %1062 = vmatprep.subr.mxu0 %v697_v8  ;;  %v692_v14 = vld [vmem:[#allocation5 + $0x9a0] sm:$0xff] }
  0xd9   : > { %v821_v13 = vld [vmem:[#allocation5 + $0xda8] sm:$0xff]  ;;  %1133 = vmatprep.subr.mxu1 %v825_v9  ;;  %v820_v15 = vld [vmem:[#allocation5 + $0xda0] sm:$0xff]  ;;  %1063 = vmatpush1.msra.mxu0 %v696_v10 }
  0xda   : > { %1134 = vmatpush1.msra.mxu1 %v824_v11  ;;  %v689_v16 = vld [vmem:[#allocation5 + $0x988] sm:$0xff]  ;;  %1064 = vmatprep.subr.mxu0 %v693_v12  ;;  %v688_v18 = vld [vmem:[#allocation5 + $0x980] sm:$0xff] }
  0xdb   : > { %v817_v17 = vld [vmem:[#allocation5 + $0xd88] sm:$0xff]  ;;  %1135 = vmatprep.subr.mxu1 %v821_v13  ;;  %v816_v19 = vld [vmem:[#allocation5 + $0xd80] sm:$0xff]  ;;  %1065 = vmatpush1.msra.mxu0 %v692_v14 }
  0xdc   : > { %1136 = vmatpush1.msra.mxu1 %v820_v15  ;;  %v685_v20 = vld [vmem:[#allocation5 + $0x968] sm:$0xff]  ;;  %1066 = vmatprep.subr.mxu0 %v689_v16  ;;  %v684_v22 = vld [vmem:[#allocation5 + $0x960] sm:$0xff] }
  0xdd   : > { %v813_v21 = vld [vmem:[#allocation5 + $0xd68] sm:$0xff]  ;;  %1137 = vmatprep.subr.mxu1 %v817_v17  ;;  %v812_v23 = vld [vmem:[#allocation5 + $0xd60] sm:$0xff]  ;;  %1067 = vmatpush1.msra.mxu0 %v688_v18 }
  0xde   : > { %1138 = vmatpush1.msra.mxu1 %v816_v19  ;;  %v681_v24 = vld [vmem:[#allocation5 + $0x948] sm:$0xff]  ;;  %1068 = vmatprep.subr.mxu0 %v685_v20  ;;  %v680_v26 = vld [vmem:[#allocation5 + $0x940] sm:$0xff] }
  0xdf   : > { %v809_v25 = vld [vmem:[#allocation5 + $0xd48] sm:$0xff]  ;;  %1139 = vmatprep.subr.mxu1 %v813_v21  ;;  %v808_v27 = vld [vmem:[#allocation5 + $0xd40] sm:$0xff]  ;;  %1069 = vmatpush1.msra.mxu0 %v684_v22 }
  0xe0   : > { %1140 = vmatpush1.msra.mxu1 %v812_v23  ;;  %v677_v28 = vld [vmem:[#allocation5 + $0x928] sm:$0xff]  ;;  %1070 = vmatprep.subr.mxu0 %v681_v24  ;;  %v676_v30 = vld [vmem:[#allocation5 + $0x920] sm:$0xff] }
  0xe1   : > { %v805_v29 = vld [vmem:[#allocation5 + $0xd28] sm:$0xff]  ;;  %1141 = vmatprep.subr.mxu1 %v809_v25  ;;  %v804_v31 = vld [vmem:[#allocation5 + $0xd20] sm:$0xff]  ;;  %1071 = vmatpush1.msra.mxu0 %v680_v26 }
  0xe2   : > { %1142 = vmatpush1.msra.mxu1 %v808_v27  ;;  %v673_v32 = vld [vmem:[#allocation5 + $0x908] sm:$0xff]  ;;  %1072 = vmatprep.subr.mxu0 %v677_v28  ;;  %v672_v34 = vld [vmem:[#allocation5 + $0x900] sm:$0xff] }
  0xe3   : > { %v801_v33 = vld [vmem:[#allocation5 + $0xd08] sm:$0xff]  ;;  %1143 = vmatprep.subr.mxu1 %v805_v29  ;;  %v800_v35 = vld [vmem:[#allocation5 + $0xd00] sm:$0xff]  ;;  %1073 = vmatpush1.msra.mxu0 %v676_v30 }
  0xe4   : > { %1144 = vmatpush1.msra.mxu1 %v804_v31  ;;  %v669_v36 = vld [vmem:[#allocation5 + $0x8e8] sm:$0xff]  ;;  %1074 = vmatprep.subr.mxu0 %v673_v32  ;;  %v668_v38 = vld [vmem:[#allocation5 + $0x8e0] sm:$0xff] }
  0xe5   : > { %v797_v37 = vld [vmem:[#allocation5 + $0xce8] sm:$0xff]  ;;  %1145 = vmatprep.subr.mxu1 %v801_v33  ;;  %v796_v39 = vld [vmem:[#allocation5 + $0xce0] sm:$0xff]  ;;  %1075 = vmatpush1.msra.mxu0 %v672_v34 }
  0xe6   : > { %1146 = vmatpush1.msra.mxu1 %v800_v35  ;;  %v665_v40 = vld [vmem:[#allocation5 + $0x8c8] sm:$0xff]  ;;  %1076 = vmatprep.subr.mxu0 %v669_v36  ;;  %v664_v42 = vld [vmem:[#allocation5 + $0x8c0] sm:$0xff] }
  0xe7   : > { %v793_v41 = vld [vmem:[#allocation5 + $0xcc8] sm:$0xff]  ;;  %1147 = vmatprep.subr.mxu1 %v797_v37  ;;  %v792_v43 = vld [vmem:[#allocation5 + $0xcc0] sm:$0xff]  ;;  %1077 = vmatpush1.msra.mxu0 %v668_v38 }
  0xe8   : > { %1148 = vmatpush1.msra.mxu1 %v796_v39  ;;  %v661_v44 = vld [vmem:[#allocation5 + $0x8a8] sm:$0xff]  ;;  %1078 = vmatprep.subr.mxu0 %v665_v40  ;;  %v660_v46 = vld [vmem:[#allocation5 + $0x8a0] sm:$0xff] }
  0xe9   : > { %v789_v45 = vld [vmem:[#allocation5 + $0xca8] sm:$0xff]  ;;  %1149 = vmatprep.subr.mxu1 %v793_v41  ;;  %v788_v47 = vld [vmem:[#allocation5 + $0xca0] sm:$0xff]  ;;  %1079 = vmatpush1.msra.mxu0 %v664_v42 }
  0xea   : > { %1150 = vmatpush1.msra.mxu1 %v792_v43  ;;  %v657_v48 = vld [vmem:[#allocation5 + $0x888] sm:$0xff]  ;;  %1080 = vmatprep.subr.mxu0 %v661_v44  ;;  %v656_v50 = vld [vmem:[#allocation5 + $0x880] sm:$0xff] }
  0xeb   : > { %v785_v49 = vld [vmem:[#allocation5 + $0xc88] sm:$0xff]  ;;  %1151 = vmatprep.subr.mxu1 %v789_v45  ;;  %v784_v51 = vld [vmem:[#allocation5 + $0xc80] sm:$0xff]  ;;  %1081 = vmatpush1.msra.mxu0 %v660_v46 }
  0xec   : > { %1152 = vmatpush1.msra.mxu1 %v788_v47  ;;  %v653_v52 = vld [vmem:[#allocation5 + $0x868] sm:$0xff]  ;;  %1082 = vmatprep.subr.mxu0 %v657_v48  ;;  %v652_v54 = vld [vmem:[#allocation5 + $0x860] sm:$0xff] }
  0xed   : > { %v781_v53 = vld [vmem:[#allocation5 + $0xc68] sm:$0xff]  ;;  %1153 = vmatprep.subr.mxu1 %v785_v49  ;;  %v780_v55 = vld [vmem:[#allocation5 + $0xc60] sm:$0xff]  ;;  %1083 = vmatpush1.msra.mxu0 %v656_v50 }
  0xee   : > { %1154 = vmatpush1.msra.mxu1 %v784_v51  ;;  %v649_v56 = vld [vmem:[#allocation5 + $0x848] sm:$0xff]  ;;  %1084 = vmatprep.subr.mxu0 %v653_v52  ;;  %v648_v58 = vld [vmem:[#allocation5 + $0x840] sm:$0xff] }
  0xef   : > { %v777_v57 = vld [vmem:[#allocation5 + $0xc48] sm:$0xff]  ;;  %1155 = vmatprep.subr.mxu1 %v781_v53  ;;  %v776_v59 = vld [vmem:[#allocation5 + $0xc40] sm:$0xff]  ;;  %1085 = vmatpush1.msra.mxu0 %v652_v54 }
  0xf0   : > { %1156 = vmatpush1.msra.mxu1 %v780_v55  ;;  %v645_v60 = vld [vmem:[#allocation5 + $0x828] sm:$0xff]  ;;  %1086 = vmatprep.subr.mxu0 %v649_v56  ;;  %v644_v62 = vld [vmem:[#allocation5 + $0x820] sm:$0xff] }
  0xf1   : > { %v773_v61 = vld [vmem:[#allocation5 + $0xc28] sm:$0xff]  ;;  %1157 = vmatprep.subr.mxu1 %v777_v57  ;;  %v772_v63 = vld [vmem:[#allocation5 + $0xc20] sm:$0xff]  ;;  %1087 = vmatpush1.msra.mxu0 %v648_v58 }
  0xf2   : > { %1158 = vmatpush1.msra.mxu1 %v776_v59  ;;  %v641_v0 = vld [vmem:[#allocation5 + $0x808] sm:$0xff]  ;;  %1088 = vmatprep.subr.mxu0 %v645_v60  ;;  %v640_v2 = vld [vmem:[#allocation5 + $0x800] sm:$0xff] }
  0xf3   : > { %v769_v1 = vld [vmem:[#allocation5 + $0xc08] sm:$0xff]  ;;  %1159 = vmatprep.subr.mxu1 %v773_v61  ;;  %v768_v3 = vld [vmem:[#allocation5 + $0xc00] sm:$0xff]  ;;  %1089 = vmatpush1.msra.mxu0 %v644_v62 }
  0xf4   : > { %1160 = vmatpush1.msra.mxu1 %v772_v63  ;;  %v765_v4 = vld [vmem:[#allocation5 + $0xbe8] sm:$0xff]  ;;  %1090 = vmatprep.subr.mxu0 %v641_v0  ;;  %v764_v6 = vld [vmem:[#allocation5 + $0xbe0] sm:$0xff] }
  0xf5   : > { %v893_v5 = vld [vmem:[#allocation5 + $0xfe8] sm:$0xff]  ;;  %1161 = vmatprep.subr.mxu1 %v769_v1  ;;  %v892_v7 = vld [vmem:[#allocation5 + $0xfe0] sm:$0xff]  ;;  %1091 = vmatpush1.msra.mxu0 %v640_v2 }
  0xf6   : > { %1162 = vmatpush1.msra.mxu1 %v768_v3  ;;  %v761_v8 = vld [vmem:[#allocation5 + $0xbc8] sm:$0xff]  ;;  %1092 = vmatprep.subr.mxu0 %v765_v4  ;;  %v760_v10 = vld [vmem:[#allocation5 + $0xbc0] sm:$0xff] }
  0xf7   : > { %v889_v9 = vld [vmem:[#allocation5 + $0xfc8] sm:$0xff]  ;;  %1163 = vmatprep.subr.mxu1 %v893_v5  ;;  %v888_v11 = vld [vmem:[#allocation5 + $0xfc0] sm:$0xff]  ;;  %1093 = vmatpush2.msra.mxu0 %v764_v6  ;;  %v383_v6 = vld [vmem:[%s2701_s1 + $0x38] sm:$0xff] }
  0xf8   : > { %1164 = vmatpush2.msra.mxu1 %v892_v7  ;;  %v757_v12 = vld [vmem:[#allocation5 + $0xba8] sm:$0xff]  ;;  %1094 = vmatprep.subr.mxu0 %v761_v8  ;;  %v756_v14 = vld [vmem:[#allocation5 + $0xba0] sm:$0xff]  ;;  %v447_v7 = vld [vmem:[#allocation5 + $0x1f8] sm:$0xff] }
  0xf9   : > { %v885_v13 = vld [vmem:[#allocation5 + $0xfa8] sm:$0xff]  ;;  %1165 = vmatprep.subr.mxu1 %v889_v9  ;;  %v884_v15 = vld [vmem:[#allocation5 + $0xfa0] sm:$0xff]  ;;  %1095 = vmatpush2.msra.mxu0 %v760_v10  ;;  %v575_v8 = vld [vmem:[#allocation5 + $0x5f8] sm:$0xff] }
  0xfa   : > { %1166 = vmatpush2.msra.mxu1 %v888_v11  ;;  %v753_v16 = vld [vmem:[#allocation5 + $0xb88] sm:$0xff]  ;;  %1096 = vmatprep.subr.mxu0 %v757_v12  ;;  %v752_v18 = vld [vmem:[#allocation5 + $0xb80] sm:$0xff]  ;;  %v382_v9 = vld [vmem:[%s2701_s1 + $0x30] sm:$0xff] }
  0xfb   : > { %v881_v17 = vld [vmem:[#allocation5 + $0xf88] sm:$0xff]  ;;  %1167 = vmatprep.subr.mxu1 %v885_v13  ;;  %v880_v19 = vld [vmem:[#allocation5 + $0xf80] sm:$0xff]  ;;  %1097 = vmatpush2.msra.mxu0 %v756_v14  ;;  %v446_v10 = vld [vmem:[#allocation5 + $0x1f0] sm:$0xff] }
  0xfc   : > { %1168 = vmatpush2.msra.mxu1 %v884_v15  ;;  %v749_v20 = vld [vmem:[#allocation5 + $0xb68] sm:$0xff]  ;;  %1098 = vmatprep.subr.mxu0 %v753_v16  ;;  %v748_v22 = vld [vmem:[#allocation5 + $0xb60] sm:$0xff]  ;;  %v574_v11 = vld [vmem:[#allocation5 + $0x5f0] sm:$0xff] }
  0xfd   : > { %v877_v21 = vld [vmem:[#allocation5 + $0xf68] sm:$0xff]  ;;  %1169 = vmatprep.subr.mxu1 %v881_v17  ;;  %v876_v23 = vld [vmem:[#allocation5 + $0xf60] sm:$0xff]  ;;  %1099 = vmatpush2.msra.mxu0 %v752_v18  ;;  %v443_v12 = vld [vmem:[#allocation5 + $0x1d8] sm:$0xff] }
  0xfe   : > { %1170 = vmatpush2.msra.mxu1 %v880_v19  ;;  %v745_v24 = vld [vmem:[#allocation5 + $0xb48] sm:$0xff]  ;;  %1100 = vmatprep.subr.mxu0 %v749_v20  ;;  %v744_v26 = vld [vmem:[#allocation5 + $0xb40] sm:$0xff]  ;;  %v571_v13 = vld [vmem:[#allocation5 + $0x5d8] sm:$0xff] }
  0xff   : > { %v873_v25 = vld [vmem:[#allocation5 + $0xf48] sm:$0xff]  ;;  %1171 = vmatprep.subr.mxu1 %v877_v21  ;;  %v872_v27 = vld [vmem:[#allocation5 + $0xf40] sm:$0xff]  ;;  %1101 = vmatpush2.msra.mxu0 %v748_v22  ;;  %v442_v14 = vld [vmem:[#allocation5 + $0x1d0] sm:$0xff] }
 0x100   : > { %1172 = vmatpush2.msra.mxu1 %v876_v23  ;;  %v741_v28 = vld [vmem:[#allocation5 + $0xb28] sm:$0xff]  ;;  %1102 = vmatprep.subr.mxu0 %v745_v24  ;;  %v740_v30 = vld [vmem:[#allocation5 + $0xb20] sm:$0xff]  ;;  %v570_v15 = vld [vmem:[#allocation5 + $0x5d0] sm:$0xff] }
 0x101   : > { %v869_v29 = vld [vmem:[#allocation5 + $0xf28] sm:$0xff]  ;;  %1173 = vmatprep.subr.mxu1 %v873_v25  ;;  %v868_v31 = vld [vmem:[#allocation5 + $0xf20] sm:$0xff]  ;;  %1103 = vmatpush2.msra.mxu0 %v744_v26  ;;  %v439_v16 = vld [vmem:[#allocation5 + $0x1b8] sm:$0xff] }
 0x102   : > { %1174 = vmatpush2.msra.mxu1 %v872_v27  ;;  %v737_v32 = vld [vmem:[#allocation5 + $0xb08] sm:$0xff]  ;;  %1104 = vmatprep.subr.mxu0 %v741_v28  ;;  %v736_v34 = vld [vmem:[#allocation5 + $0xb00] sm:$0xff]  ;;  %v567_v17 = vld [vmem:[#allocation5 + $0x5b8] sm:$0xff] }
 0x103   : > { %v865_v33 = vld [vmem:[#allocation5 + $0xf08] sm:$0xff]  ;;  %1175 = vmatprep.subr.mxu1 %v869_v29  ;;  %v864_v35 = vld [vmem:[#allocation5 + $0xf00] sm:$0xff]  ;;  %1105 = vmatpush2.msra.mxu0 %v740_v30  ;;  %v438_v18 = vld [vmem:[#allocation5 + $0x1b0] sm:$0xff] }
 0x104   : > { %1176 = vmatpush2.msra.mxu1 %v868_v31  ;;  %v733_v36 = vld [vmem:[#allocation5 + $0xae8] sm:$0xff]  ;;  %1106 = vmatprep.subr.mxu0 %v737_v32  ;;  %v732_v38 = vld [vmem:[#allocation5 + $0xae0] sm:$0xff]  ;;  %v566_v19 = vld [vmem:[#allocation5 + $0x5b0] sm:$0xff] }
 0x105   : > { %v861_v37 = vld [vmem:[#allocation5 + $0xee8] sm:$0xff]  ;;  %1177 = vmatprep.subr.mxu1 %v865_v33  ;;  %v860_v39 = vld [vmem:[#allocation5 + $0xee0] sm:$0xff]  ;;  %1107 = vmatpush2.msra.mxu0 %v736_v34  ;;  %v435_v20 = vld [vmem:[#allocation5 + $0x198] sm:$0xff] }
 0x106   : > { %1178 = vmatpush2.msra.mxu1 %v864_v35  ;;  %v729_v40 = vld [vmem:[#allocation5 + $0xac8] sm:$0xff]  ;;  %1108 = vmatprep.subr.mxu0 %v733_v36  ;;  %v728_v42 = vld [vmem:[#allocation5 + $0xac0] sm:$0xff]  ;;  %v563_v21 = vld [vmem:[#allocation5 + $0x598] sm:$0xff] }
 0x107   : > { %v857_v41 = vld [vmem:[#allocation5 + $0xec8] sm:$0xff]  ;;  %1179 = vmatprep.subr.mxu1 %v861_v37  ;;  %v856_v43 = vld [vmem:[#allocation5 + $0xec0] sm:$0xff]  ;;  %1109 = vmatpush2.msra.mxu0 %v732_v38  ;;  %v434_v22 = vld [vmem:[#allocation5 + $0x190] sm:$0xff] }
 0x108   : > { %1180 = vmatpush2.msra.mxu1 %v860_v39  ;;  %v725_v44 = vld [vmem:[#allocation5 + $0xaa8] sm:$0xff]  ;;  %1110 = vmatprep.subr.mxu0 %v729_v40  ;;  %v724_v46 = vld [vmem:[#allocation5 + $0xaa0] sm:$0xff]  ;;  %v562_v23 = vld [vmem:[#allocation5 + $0x590] sm:$0xff] }
 0x109   : > { %v853_v45 = vld [vmem:[#allocation5 + $0xea8] sm:$0xff]  ;;  %1181 = vmatprep.subr.mxu1 %v857_v41  ;;  %v852_v47 = vld [vmem:[#allocation5 + $0xea0] sm:$0xff]  ;;  %1111 = vmatpush2.msra.mxu0 %v728_v42  ;;  %v431_v24 = vld [vmem:[#allocation5 + $0x178] sm:$0xff] }
 0x10a   : > { %1182 = vmatpush2.msra.mxu1 %v856_v43  ;;  %v721_v48 = vld [vmem:[#allocation5 + $0xa88] sm:$0xff]  ;;  %1112 = vmatprep.subr.mxu0 %v725_v44  ;;  %v720_v50 = vld [vmem:[#allocation5 + $0xa80] sm:$0xff]  ;;  %v559_v25 = vld [vmem:[#allocation5 + $0x578] sm:$0xff] }
 0x10b   : > { %v849_v49 = vld [vmem:[#allocation5 + $0xe88] sm:$0xff]  ;;  %1183 = vmatprep.subr.mxu1 %v853_v45  ;;  %v848_v51 = vld [vmem:[#allocation5 + $0xe80] sm:$0xff]  ;;  %1113 = vmatpush2.msra.mxu0 %v724_v46  ;;  %v430_v26 = vld [vmem:[#allocation5 + $0x170] sm:$0xff] }
 0x10c   : > { %1184 = vmatpush2.msra.mxu1 %v852_v47  ;;  %v717_v52 = vld [vmem:[#allocation5 + $0xa68] sm:$0xff]  ;;  %1114 = vmatprep.subr.mxu0 %v721_v48  ;;  %v716_v54 = vld [vmem:[#allocation5 + $0xa60] sm:$0xff]  ;;  %v558_v27 = vld [vmem:[#allocation5 + $0x570] sm:$0xff] }
 0x10d   : > { %v845_v53 = vld [vmem:[#allocation5 + $0xe68] sm:$0xff]  ;;  %1185 = vmatprep.subr.mxu1 %v849_v49  ;;  %v844_v55 = vld [vmem:[#allocation5 + $0xe60] sm:$0xff]  ;;  %1115 = vmatpush2.msra.mxu0 %v720_v50  ;;  %v427_v28 = vld [vmem:[#allocation5 + $0x158] sm:$0xff] }
 0x10e   : > { %1186 = vmatpush2.msra.mxu1 %v848_v51  ;;  %v713_v56 = vld [vmem:[#allocation5 + $0xa48] sm:$0xff]  ;;  %1116 = vmatprep.subr.mxu0 %v717_v52  ;;  %v712_v58 = vld [vmem:[#allocation5 + $0xa40] sm:$0xff]  ;;  %v555_v29 = vld [vmem:[#allocation5 + $0x558] sm:$0xff] }
 0x10f   : > { %v841_v57 = vld [vmem:[#allocation5 + $0xe48] sm:$0xff]  ;;  %1187 = vmatprep.subr.mxu1 %v845_v53  ;;  %v840_v59 = vld [vmem:[#allocation5 + $0xe40] sm:$0xff]  ;;  %1117 = vmatpush2.msra.mxu0 %v716_v54  ;;  %v426_v30 = vld [vmem:[#allocation5 + $0x150] sm:$0xff] }
 0x110   : > { %1188 = vmatpush2.msra.mxu1 %v844_v55  ;;  %v709_v60 = vld [vmem:[#allocation5 + $0xa28] sm:$0xff]  ;;  %1118 = vmatprep.subr.mxu0 %v713_v56  ;;  %v708_v62 = vld [vmem:[#allocation5 + $0xa20] sm:$0xff]  ;;  %v554_v31 = vld [vmem:[#allocation5 + $0x550] sm:$0xff] }
 0x111   : > { %v837_v61 = vld [vmem:[#allocation5 + $0xe28] sm:$0xff]  ;;  %1189 = vmatprep.subr.mxu1 %v841_v57  ;;  %v836_v63 = vld [vmem:[#allocation5 + $0xe20] sm:$0xff]  ;;  %1119 = vmatpush2.msra.mxu0 %v712_v58  ;;  %v423_v32 = vld [vmem:[#allocation5 + $0x138] sm:$0xff] }
 0x112   : > { %1190 = vmatpush2.msra.mxu1 %v840_v59  ;;  %v705_v0 = vld [vmem:[#allocation5 + $0xa08] sm:$0xff]  ;;  %1120 = vmatprep.subr.mxu0 %v709_v60  ;;  %v704_v2 = vld [vmem:[#allocation5 + $0xa00] sm:$0xff]  ;;  %v551_v33 = vld [vmem:[#allocation5 + $0x538] sm:$0xff] }
 0x113   : > { %v833_v1 = vld [vmem:[#allocation5 + $0xe08] sm:$0xff]  ;;  %1191 = vmatprep.subr.mxu1 %v837_v61  ;;  %1121 = vmatpush2.msra.mxu0 %v708_v62  ;;  %v832_v4 = vld [vmem:[#allocation5 + $0xe00] sm:$0xff]  ;;  %v422_v34 = vld [vmem:[#allocation5 + $0x130] sm:$0xff] }
 0x114   : > { %v381_v3 = vld [vmem:[%s2701_s1 + $0x28] sm:$0xff]  ;;  %1192 = vmatpush2.msra.mxu1 %v836_v63  ;;  %v380_v5 = vld [vmem:[%s2701_s1 + $0x20] sm:$0xff]  ;;  %1122 = vmatprep.subr.mxu0 %v705_v0  ;;  %v550_v35 = vld [vmem:[#allocation5 + $0x530] sm:$0xff] }
 0x115   : > { %1193 = vmatprep.subr.mxu1 %v833_v1  ;;  %1123 = vmatpush2.msra.mxu0 %v704_v2  ;;  %v419_v36 = vld [vmem:[#allocation5 + $0x118] sm:$0xff]  ;;  %v418_v38 = vld [vmem:[#allocation5 + $0x110] sm:$0xff] }
 0x116   : > { %1124 = vmatprep.mubr.f32.mxu0 %v381_v3  ;;  %1194 = vmatpush2.msra.mxu1 %v832_v4  ;;  %v547_v37 = vld [vmem:[#allocation5 + $0x518] sm:$0xff]  ;;  %v546_v39 = vld [vmem:[#allocation5 + $0x510] sm:$0xff] }
 0x117   : > { %1125 = vmatmul.mubr.f32.vlgmr.msra.gmra.mxu0 %v380_v5  ;;  %1195 = vmatprep.mubr.f32.mxu1 %v383_v6  ;;  %v415_v40 = vld [vmem:[#allocation5 + $0xf8] sm:$0xff]  ;;  %v414_v42 = vld [vmem:[#allocation5 + $0xf0] sm:$0xff] }
 0x118   : > { %1202 = vmatprep.subr.mxu0 %v447_v7  ;;  %1273 = vmatprep.subr.mxu1 %v575_v8  ;;  %v543_v41 = vld [vmem:[#allocation5 + $0x4f8] sm:$0xff]  ;;  %v542_v43 = vld [vmem:[#allocation5 + $0x4f0] sm:$0xff] }
 0x119   : > { %1196 = vmatmul.mubr.f32.vlgmr.msra.gmra.mxu1 %v382_v9  ;;  %1203 = vmatpush1.msra.mxu0 %v446_v10  ;;  %v411_v44 = vld [vmem:[#allocation5 + $0xd8] sm:$0xff]  ;;  %v410_v46 = vld [vmem:[#allocation5 + $0xd0] sm:$0xff] }
 0x11a   : > { %1274 = vmatpush1.msra.mxu1 %v574_v11  ;;  %1204 = vmatprep.subr.mxu0 %v443_v12  ;;  %v539_v45 = vld [vmem:[#allocation5 + $0x4d8] sm:$0xff]  ;;  %v538_v47 = vld [vmem:[#allocation5 + $0x4d0] sm:$0xff] }
 0x11b   : > { %1275 = vmatprep.subr.mxu1 %v571_v13  ;;  %1205 = vmatpush1.msra.mxu0 %v442_v14  ;;  %v407_v48 = vld [vmem:[#allocation5 + $0xb8] sm:$0xff]  ;;  %v406_v50 = vld [vmem:[#allocation5 + $0xb0] sm:$0xff] }
 0x11c   : > { %1276 = vmatpush1.msra.mxu1 %v570_v15  ;;  %1206 = vmatprep.subr.mxu0 %v439_v16  ;;  %v535_v49 = vld [vmem:[#allocation5 + $0x4b8] sm:$0xff]  ;;  %v534_v51 = vld [vmem:[#allocation5 + $0x4b0] sm:$0xff] }
 0x11d   : > { %1277 = vmatprep.subr.mxu1 %v567_v17  ;;  %1207 = vmatpush1.msra.mxu0 %v438_v18  ;;  %v403_v52 = vld [vmem:[#allocation5 + $0x98] sm:$0xff]  ;;  %v402_v54 = vld [vmem:[#allocation5 + $0x90] sm:$0xff] }
 0x11e   : > { %1278 = vmatpush1.msra.mxu1 %v566_v19  ;;  %1208 = vmatprep.subr.mxu0 %v435_v20  ;;  %v531_v53 = vld [vmem:[#allocation5 + $0x498] sm:$0xff]  ;;  %v530_v55 = vld [vmem:[#allocation5 + $0x490] sm:$0xff] }
 0x11f   : > { %1279 = vmatprep.subr.mxu1 %v563_v21  ;;  %1209 = vmatpush1.msra.mxu0 %v434_v22  ;;  %v399_v56 = vld [vmem:[#allocation5 + $0x78] sm:$0xff]  ;;  %v398_v58 = vld [vmem:[#allocation5 + $0x70] sm:$0xff] }
 0x120   : > { %1280 = vmatpush1.msra.mxu1 %v562_v23  ;;  %1210 = vmatprep.subr.mxu0 %v431_v24  ;;  %v527_v57 = vld [vmem:[#allocation5 + $0x478] sm:$0xff]  ;;  %v526_v59 = vld [vmem:[#allocation5 + $0x470] sm:$0xff] }
 0x121   : > { %1281 = vmatprep.subr.mxu1 %v559_v25  ;;  %1211 = vmatpush1.msra.mxu0 %v430_v26  ;;  %v395_v60 = vld [vmem:[#allocation5 + $0x58] sm:$0xff]  ;;  %v394_v62 = vld [vmem:[#allocation5 + $0x50] sm:$0xff] }
 0x122   : > { %1282 = vmatpush1.msra.mxu1 %v558_v27  ;;  %1212 = vmatprep.subr.mxu0 %v427_v28  ;;  %v523_v61 = vld [vmem:[#allocation5 + $0x458] sm:$0xff]  ;;  %v522_v63 = vld [vmem:[#allocation5 + $0x450] sm:$0xff] }
 0x123   : > { %1283 = vmatprep.subr.mxu1 %v555_v29  ;;  %1213 = vmatpush1.msra.mxu0 %v426_v30  ;;  %v391_v0 = vld [vmem:[#allocation5 + $0x38] sm:$0xff]  ;;  %v390_v2 = vld [vmem:[#allocation5 + $0x30] sm:$0xff] }
 0x124   : > { %1284 = vmatpush1.msra.mxu1 %v554_v31  ;;  %1214 = vmatprep.subr.mxu0 %v423_v32  ;;  %v519_v1 = vld [vmem:[#allocation5 + $0x438] sm:$0xff]  ;;  %v518_v3 = vld [vmem:[#allocation5 + $0x430] sm:$0xff] }
 0x125   : > { %1285 = vmatprep.subr.mxu1 %v551_v33  ;;  %1215 = vmatpush1.msra.mxu0 %v422_v34  ;;  %v387_v4 = vld [vmem:[#allocation5 + $0x18] sm:$0xff]  ;;  %v386_v6 = vld [vmem:[#allocation5 + $0x10] sm:$0xff] }
 0x126   : > { %1286 = vmatpush1.msra.mxu1 %v550_v35  ;;  %1216 = vmatprep.subr.mxu0 %v419_v36  ;;  %v515_v5 = vld [vmem:[#allocation5 + $0x418] sm:$0xff]  ;;  %v514_v7 = vld [vmem:[#allocation5 + $0x410] sm:$0xff] }
 0x127   : > { %1287 = vmatprep.subr.mxu1 %v547_v37  ;;  %1217 = vmatpush1.msra.mxu0 %v418_v38  ;;  %v511_v8 = vld [vmem:[#allocation5 + $0x3f8] sm:$0xff]  ;;  %v510_v10 = vld [vmem:[#allocation5 + $0x3f0] sm:$0xff] }
 0x128   : > { %1288 = vmatpush1.msra.mxu1 %v546_v39  ;;  %1218 = vmatprep.subr.mxu0 %v415_v40  ;;  %v639_v9 = vld [vmem:[#allocation5 + $0x7f8] sm:$0xff]  ;;  %v638_v11 = vld [vmem:[#allocation5 + $0x7f0] sm:$0xff] }
 0x129   : > { %1289 = vmatprep.subr.mxu1 %v543_v41  ;;  %1219 = vmatpush1.msra.mxu0 %v414_v42  ;;  %v507_v12 = vld [vmem:[#allocation5 + $0x3d8] sm:$0xff]  ;;  %v506_v14 = vld [vmem:[#allocation5 + $0x3d0] sm:$0xff] }
 0x12a   : > { %1290 = vmatpush1.msra.mxu1 %v542_v43  ;;  %1220 = vmatprep.subr.mxu0 %v411_v44  ;;  %v635_v13 = vld [vmem:[#allocation5 + $0x7d8] sm:$0xff]  ;;  %v634_v15 = vld [vmem:[#allocation5 + $0x7d0] sm:$0xff] }
 0x12b   : > { %1291 = vmatprep.subr.mxu1 %v539_v45  ;;  %1221 = vmatpush1.msra.mxu0 %v410_v46  ;;  %v503_v16 = vld [vmem:[#allocation5 + $0x3b8] sm:$0xff]  ;;  %v502_v18 = vld [vmem:[#allocation5 + $0x3b0] sm:$0xff] }
 0x12c   : > { %1292 = vmatpush1.msra.mxu1 %v538_v47  ;;  %1222 = vmatprep.subr.mxu0 %v407_v48  ;;  %v631_v17 = vld [vmem:[#allocation5 + $0x7b8] sm:$0xff]  ;;  %v630_v19 = vld [vmem:[#allocation5 + $0x7b0] sm:$0xff] }
 0x12d   : > { %1293 = vmatprep.subr.mxu1 %v535_v49  ;;  %1223 = vmatpush1.msra.mxu0 %v406_v50  ;;  %v499_v20 = vld [vmem:[#allocation5 + $0x398] sm:$0xff]  ;;  %v498_v22 = vld [vmem:[#allocation5 + $0x390] sm:$0xff] }
 0x12e   : > { %1294 = vmatpush1.msra.mxu1 %v534_v51  ;;  %1224 = vmatprep.subr.mxu0 %v403_v52  ;;  %v627_v21 = vld [vmem:[#allocation5 + $0x798] sm:$0xff]  ;;  %v626_v23 = vld [vmem:[#allocation5 + $0x790] sm:$0xff] }
 0x12f   : > { %1295 = vmatprep.subr.mxu1 %v531_v53  ;;  %1225 = vmatpush1.msra.mxu0 %v402_v54  ;;  %v495_v24 = vld [vmem:[#allocation5 + $0x378] sm:$0xff]  ;;  %v494_v26 = vld [vmem:[#allocation5 + $0x370] sm:$0xff] }
 0x130   : > { %1296 = vmatpush1.msra.mxu1 %v530_v55  ;;  %1226 = vmatprep.subr.mxu0 %v399_v56  ;;  %v623_v25 = vld [vmem:[#allocation5 + $0x778] sm:$0xff]  ;;  %v622_v27 = vld [vmem:[#allocation5 + $0x770] sm:$0xff] }
 0x131   : > { %1297 = vmatprep.subr.mxu1 %v527_v57  ;;  %1227 = vmatpush1.msra.mxu0 %v398_v58  ;;  %v491_v28 = vld [vmem:[#allocation5 + $0x358] sm:$0xff]  ;;  %v490_v30 = vld [vmem:[#allocation5 + $0x350] sm:$0xff] }
 0x132   : > { %1298 = vmatpush1.msra.mxu1 %v526_v59  ;;  %1228 = vmatprep.subr.mxu0 %v395_v60  ;;  %v619_v29 = vld [vmem:[#allocation5 + $0x758] sm:$0xff]  ;;  %v618_v31 = vld [vmem:[#allocation5 + $0x750] sm:$0xff] }
 0x133   : > { %1299 = vmatprep.subr.mxu1 %v523_v61  ;;  %1229 = vmatpush1.msra.mxu0 %v394_v62  ;;  %v487_v32 = vld [vmem:[#allocation5 + $0x338] sm:$0xff]  ;;  %v486_v34 = vld [vmem:[#allocation5 + $0x330] sm:$0xff] }
 0x134   : > { %1300 = vmatpush1.msra.mxu1 %v522_v63  ;;  %1230 = vmatprep.subr.mxu0 %v391_v0  ;;  %v615_v33 = vld [vmem:[#allocation5 + $0x738] sm:$0xff]  ;;  %v614_v35 = vld [vmem:[#allocation5 + $0x730] sm:$0xff] }
 0x135   : > { %1301 = vmatprep.subr.mxu1 %v519_v1  ;;  %1231 = vmatpush1.msra.mxu0 %v390_v2  ;;  %v483_v36 = vld [vmem:[#allocation5 + $0x318] sm:$0xff]  ;;  %v482_v38 = vld [vmem:[#allocation5 + $0x310] sm:$0xff] }
 0x136   : > { %1302 = vmatpush1.msra.mxu1 %v518_v3  ;;  %1232 = vmatprep.subr.mxu0 %v387_v4  ;;  %v611_v37 = vld [vmem:[#allocation5 + $0x718] sm:$0xff]  ;;  %v610_v39 = vld [vmem:[#allocation5 + $0x710] sm:$0xff] }
 0x137   : > { %1303 = vmatprep.subr.mxu1 %v515_v5  ;;  %1233 = vmatpush1.msra.mxu0 %v386_v6  ;;  %v479_v40 = vld [vmem:[#allocation5 + $0x2f8] sm:$0xff]  ;;  %v478_v42 = vld [vmem:[#allocation5 + $0x2f0] sm:$0xff] }
 0x138   : > { %1304 = vmatpush1.msra.mxu1 %v514_v7  ;;  %1234 = vmatprep.subr.mxu0 %v511_v8  ;;  %v607_v41 = vld [vmem:[#allocation5 + $0x6f8] sm:$0xff]  ;;  %v606_v43 = vld [vmem:[#allocation5 + $0x6f0] sm:$0xff] }
 0x139   : > { %1305 = vmatprep.subr.mxu1 %v639_v9  ;;  %1235 = vmatpush2.msra.mxu0 %v510_v10  ;;  %v475_v44 = vld [vmem:[#allocation5 + $0x2d8] sm:$0xff]  ;;  %v474_v46 = vld [vmem:[#allocation5 + $0x2d0] sm:$0xff]  ;;  %v2211_v9 = vld [vmem:[%s2701_s1 + $0x8] sm:$0xff] }
 0x13a   : > { %1306 = vmatpush2.msra.mxu1 %v638_v11  ;;  %1236 = vmatprep.subr.mxu0 %v507_v12  ;;  %v603_v45 = vld [vmem:[#allocation5 + $0x6d8] sm:$0xff]  ;;  %v602_v47 = vld [vmem:[#allocation5 + $0x6d0] sm:$0xff]  ;;  %v2212_v11 = vld [vmem:[%s2701_s1] sm:$0xff] }
 0x13b   : > { %1307 = vmatprep.subr.mxu1 %v635_v13  ;;  %1237 = vmatpush2.msra.mxu0 %v506_v14  ;;  %v471_v48 = vld [vmem:[#allocation5 + $0x2b8] sm:$0xff]  ;;  %v470_v50 = vld [vmem:[#allocation5 + $0x2b0] sm:$0xff] }
 0x13c   : > { %1308 = vmatpush2.msra.mxu1 %v634_v15  ;;  %1238 = vmatprep.subr.mxu0 %v503_v16  ;;  %v599_v49 = vld [vmem:[#allocation5 + $0x6b8] sm:$0xff]  ;;  %v598_v51 = vld [vmem:[#allocation5 + $0x6b0] sm:$0xff] }
 0x13d   : > { %1309 = vmatprep.subr.mxu1 %v631_v17  ;;  %1239 = vmatpush2.msra.mxu0 %v502_v18  ;;  %v467_v52 = vld [vmem:[#allocation5 + $0x298] sm:$0xff]  ;;  %v466_v54 = vld [vmem:[#allocation5 + $0x290] sm:$0xff] }
 0x13e   : > { %1310 = vmatpush2.msra.mxu1 %v630_v19  ;;  %1240 = vmatprep.subr.mxu0 %v499_v20  ;;  %v595_v53 = vld [vmem:[#allocation5 + $0x698] sm:$0xff]  ;;  %v594_v55 = vld [vmem:[#allocation5 + $0x690] sm:$0xff] }
 0x13f   : > { %1311 = vmatprep.subr.mxu1 %v627_v21  ;;  %1241 = vmatpush2.msra.mxu0 %v498_v22  ;;  %v463_v56 = vld [vmem:[#allocation5 + $0x278] sm:$0xff]  ;;  %v462_v58 = vld [vmem:[#allocation5 + $0x270] sm:$0xff] }
 0x140   : > { %1312 = vmatpush2.msra.mxu1 %v626_v23  ;;  %1242 = vmatprep.subr.mxu0 %v495_v24  ;;  %v591_v57 = vld [vmem:[#allocation5 + $0x678] sm:$0xff]  ;;  %v590_v59 = vld [vmem:[#allocation5 + $0x670] sm:$0xff] }
 0x141   : > { %1313 = vmatprep.subr.mxu1 %v623_v25  ;;  %1243 = vmatpush2.msra.mxu0 %v494_v26  ;;  %v459_v60 = vld [vmem:[#allocation5 + $0x258] sm:$0xff]  ;;  %v458_v62 = vld [vmem:[#allocation5 + $0x250] sm:$0xff] }
 0x142   : > { %1314 = vmatpush2.msra.mxu1 %v622_v27  ;;  %1244 = vmatprep.subr.mxu0 %v491_v28  ;;  %v587_v61 = vld [vmem:[#allocation5 + $0x658] sm:$0xff]  ;;  %v586_v63 = vld [vmem:[#allocation5 + $0x650] sm:$0xff] }
 0x143   : > { %1315 = vmatprep.subr.mxu1 %v619_v29  ;;  %1245 = vmatpush2.msra.mxu0 %v490_v30  ;;  %v455_v0 = vld [vmem:[#allocation5 + $0x238] sm:$0xff]  ;;  %v454_v2 = vld [vmem:[#allocation5 + $0x230] sm:$0xff] }
 0x144   : > { %1316 = vmatpush2.msra.mxu1 %v618_v31  ;;  %1246 = vmatprep.subr.mxu0 %v487_v32  ;;  %v583_v1 = vld [vmem:[#allocation5 + $0x638] sm:$0xff]  ;;  %v582_v3 = vld [vmem:[#allocation5 + $0x630] sm:$0xff] }
 0x145   : > { %1317 = vmatprep.subr.mxu1 %v615_v33  ;;  %1247 = vmatpush2.msra.mxu0 %v486_v34  ;;  %v451_v4 = vld [vmem:[#allocation5 + $0x218] sm:$0xff]  ;;  %v450_v6 = vld [vmem:[#allocation5 + $0x210] sm:$0xff] }
 0x146   : > { %1318 = vmatpush2.msra.mxu1 %v614_v35  ;;  %1248 = vmatprep.subr.mxu0 %v483_v36  ;;  %v579_v5 = vld [vmem:[#allocation5 + $0x618] sm:$0xff]  ;;  %v578_v7 = vld [vmem:[#allocation5 + $0x610] sm:$0xff] }
 0x147   : > { %1319 = vmatprep.subr.mxu1 %v611_v37  ;;  %1249 = vmatpush2.msra.mxu0 %v482_v38  ;;  %v703_v8 = vld [vmem:[#allocation5 + $0x9f8] sm:$0xff]  ;;  %v702_v12 = vld [vmem:[#allocation5 + $0x9f0] sm:$0xff] }
 0x148   : > { %1320 = vmatpush2.msra.mxu1 %v610_v39  ;;  %1250 = vmatprep.subr.mxu0 %v479_v40  ;;  %v831_v10 = vld [vmem:[#allocation5 + $0xdf8] sm:$0xff]  ;;  %v830_v13 = vld [vmem:[#allocation5 + $0xdf0] sm:$0xff] }
 0x149   : > { %1321 = vmatprep.subr.mxu1 %v607_v41  ;;  %1251 = vmatpush2.msra.mxu0 %v478_v42  ;;  %v2213_v14 = vld [vmem:[%s2701_s1 + $0x18] sm:$0xff]  ;;  %v2214_v17 = vld [vmem:[%s2701_s1 + $0x10] sm:$0xff] }
 0x14a   : > { %1322 = vmatpush2.msra.mxu1 %v606_v43  ;;  %1252 = vmatprep.subr.mxu0 %v475_v44  ;;  %v699_v15 = vld [vmem:[#allocation5 + $0x9d8] sm:$0xff]  ;;  %v698_v18 = vld [vmem:[#allocation5 + $0x9d0] sm:$0xff] }
 0x14b   : > { %1323 = vmatprep.subr.mxu1 %v603_v45  ;;  %1253 = vmatpush2.msra.mxu0 %v474_v46  ;;  %v827_v16 = vld [vmem:[#allocation5 + $0xdd8] sm:$0xff]  ;;  %v826_v19 = vld [vmem:[#allocation5 + $0xdd0] sm:$0xff] }
 0x14c   : > { %1324 = vmatpush2.msra.mxu1 %v602_v47  ;;  %1254 = vmatprep.subr.mxu0 %v471_v48  ;;  %v695_v20 = vld [vmem:[#allocation5 + $0x9b8] sm:$0xff]  ;;  %v694_v22 = vld [vmem:[#allocation5 + $0x9b0] sm:$0xff] }
 0x14d   : > { %1325 = vmatprep.subr.mxu1 %v599_v49  ;;  %1255 = vmatpush2.msra.mxu0 %v470_v50  ;;  %v823_v21 = vld [vmem:[#allocation5 + $0xdb8] sm:$0xff]  ;;  %v822_v23 = vld [vmem:[#allocation5 + $0xdb0] sm:$0xff] }
 0x14e   : > { %1326 = vmatpush2.msra.mxu1 %v598_v51  ;;  %1256 = vmatprep.subr.mxu0 %v467_v52  ;;  %v691_v24 = vld [vmem:[#allocation5 + $0x998] sm:$0xff]  ;;  %v690_v26 = vld [vmem:[#allocation5 + $0x990] sm:$0xff] }
 0x14f   : > { %1327 = vmatprep.subr.mxu1 %v595_v53  ;;  %1257 = vmatpush2.msra.mxu0 %v466_v54  ;;  %v819_v25 = vld [vmem:[#allocation5 + $0xd98] sm:$0xff]  ;;  %v818_v27 = vld [vmem:[#allocation5 + $0xd90] sm:$0xff] }
 0x150   : > { %1328 = vmatpush2.msra.mxu1 %v594_v55  ;;  %1258 = vmatprep.subr.mxu0 %v463_v56  ;;  %v687_v28 = vld [vmem:[#allocation5 + $0x978] sm:$0xff]  ;;  %v686_v30 = vld [vmem:[#allocation5 + $0x970] sm:$0xff] }
 0x151   : > { %1329 = vmatprep.subr.mxu1 %v591_v57  ;;  %1259 = vmatpush2.msra.mxu0 %v462_v58  ;;  %v815_v29 = vld [vmem:[#allocation5 + $0xd78] sm:$0xff]  ;;  %v814_v31 = vld [vmem:[#allocation5 + $0xd70] sm:$0xff] }
 0x152   : > { %1330 = vmatpush2.msra.mxu1 %v590_v59  ;;  %1260 = vmatprep.subr.mxu0 %v459_v60  ;;  %v683_v32 = vld [vmem:[#allocation5 + $0x958] sm:$0xff]  ;;  %v682_v34 = vld [vmem:[#allocation5 + $0x950] sm:$0xff] }
 0x153   : > { %1331 = vmatprep.subr.mxu1 %v587_v61  ;;  %1261 = vmatpush2.msra.mxu0 %v458_v62  ;;  %v811_v33 = vld [vmem:[#allocation5 + $0xd58] sm:$0xff]  ;;  %v810_v35 = vld [vmem:[#allocation5 + $0xd50] sm:$0xff] }
 0x154   : > { %1332 = vmatpush2.msra.mxu1 %v586_v63  ;;  %1262 = vmatprep.subr.mxu0 %v455_v0  ;;  %v679_v36 = vld [vmem:[#allocation5 + $0x938] sm:$0xff]  ;;  %v678_v38 = vld [vmem:[#allocation5 + $0x930] sm:$0xff] }
 0x155   : > { %1333 = vmatprep.subr.mxu1 %v583_v1  ;;  %1263 = vmatpush2.msra.mxu0 %v454_v2  ;;  %v807_v37 = vld [vmem:[#allocation5 + $0xd38] sm:$0xff]  ;;  %v806_v39 = vld [vmem:[#allocation5 + $0xd30] sm:$0xff] }
 0x156   : > { %1334 = vmatpush2.msra.mxu1 %v582_v3  ;;  %1264 = vmatprep.subr.mxu0 %v451_v4  ;;  %v675_v40 = vld [vmem:[#allocation5 + $0x918] sm:$0xff]  ;;  %v674_v42 = vld [vmem:[#allocation5 + $0x910] sm:$0xff] }
 0x157   : > { %1335 = vmatprep.subr.mxu1 %v579_v5  ;;  %1265 = vmatpush2.msra.mxu0 %v450_v6  ;;  %v803_v41 = vld [vmem:[#allocation5 + $0xd18] sm:$0xff]  ;;  %v802_v43 = vld [vmem:[#allocation5 + $0xd10] sm:$0xff] }
 0x158   : > { %1266 = vmatprep.mubr.f32.mxu0 %v2211_v9  ;;  %1336 = vmatpush2.msra.mxu1 %v578_v7  ;;  %v671_v44 = vld [vmem:[#allocation5 + $0x8f8] sm:$0xff]  ;;  %v670_v46 = vld [vmem:[#allocation5 + $0x8f0] sm:$0xff] }
 0x159   : > { %1267 = vmatmul.mubr.f32.vlgmr.msra.gmra.mxu0 %v2212_v11  ;;  %1337 = vmatprep.mubr.f32.mxu1 %v2213_v14  ;;  %v799_v45 = vld [vmem:[#allocation5 + $0xcf8] sm:$0xff]  ;;  %v798_v47 = vld [vmem:[#allocation5 + $0xcf0] sm:$0xff] }
 0x15a   : > { %1344 = vmatprep.subr.mxu0 %v703_v8  ;;  %1415 = vmatprep.subr.mxu1 %v831_v10  ;;  %v667_v48 = vld [vmem:[#allocation5 + $0x8d8] sm:$0xff]  ;;  %v666_v50 = vld [vmem:[#allocation5 + $0x8d0] sm:$0xff] }
 0x15b   : > { %1338 = vmatmul.mubr.f32.vlgmr.msra.gmra.mxu1 %v2214_v17  ;;  %1345 = vmatpush1.msra.mxu0 %v702_v12  ;;  %v795_v49 = vld [vmem:[#allocation5 + $0xcd8] sm:$0xff]  ;;  %v794_v51 = vld [vmem:[#allocation5 + $0xcd0] sm:$0xff] }
 0x15c   : > { %1416 = vmatpush1.msra.mxu1 %v830_v13  ;;  %1346 = vmatprep.subr.mxu0 %v699_v15  ;;  %v663_v52 = vld [vmem:[#allocation5 + $0x8b8] sm:$0xff]  ;;  %v662_v54 = vld [vmem:[#allocation5 + $0x8b0] sm:$0xff] }
 0x15d   : > { %1417 = vmatprep.subr.mxu1 %v827_v16  ;;  %1347 = vmatpush1.msra.mxu0 %v698_v18  ;;  %v791_v53 = vld [vmem:[#allocation5 + $0xcb8] sm:$0xff]  ;;  %v790_v55 = vld [vmem:[#allocation5 + $0xcb0] sm:$0xff] }
 0x15e   : > { %1418 = vmatpush1.msra.mxu1 %v826_v19  ;;  %1348 = vmatprep.subr.mxu0 %v695_v20  ;;  %v659_v56 = vld [vmem:[#allocation5 + $0x898] sm:$0xff]  ;;  %v658_v58 = vld [vmem:[#allocation5 + $0x890] sm:$0xff] }
 0x15f   : > { %1419 = vmatprep.subr.mxu1 %v823_v21  ;;  %1349 = vmatpush1.msra.mxu0 %v694_v22  ;;  %v787_v57 = vld [vmem:[#allocation5 + $0xc98] sm:$0xff]  ;;  %v786_v59 = vld [vmem:[#allocation5 + $0xc90] sm:$0xff] }
 0x160   : > { %1420 = vmatpush1.msra.mxu1 %v822_v23  ;;  %1350 = vmatprep.subr.mxu0 %v691_v24  ;;  %v655_v60 = vld [vmem:[#allocation5 + $0x878] sm:$0xff]  ;;  %v654_v62 = vld [vmem:[#allocation5 + $0x870] sm:$0xff] }
 0x161   : > { %1421 = vmatprep.subr.mxu1 %v819_v25  ;;  %1351 = vmatpush1.msra.mxu0 %v690_v26  ;;  %v783_v61 = vld [vmem:[#allocation5 + $0xc78] sm:$0xff]  ;;  %v782_v63 = vld [vmem:[#allocation5 + $0xc70] sm:$0xff] }
 0x162   : > { %1422 = vmatpush1.msra.mxu1 %v818_v27  ;;  %1352 = vmatprep.subr.mxu0 %v687_v28  ;;  %v651_v0 = vld [vmem:[#allocation5 + $0x858] sm:$0xff]  ;;  %v650_v2 = vld [vmem:[#allocation5 + $0x850] sm:$0xff] }
 0x163   : > { %1423 = vmatprep.subr.mxu1 %v815_v29  ;;  %1353 = vmatpush1.msra.mxu0 %v686_v30  ;;  %v779_v1 = vld [vmem:[#allocation5 + $0xc58] sm:$0xff]  ;;  %v778_v3 = vld [vmem:[#allocation5 + $0xc50] sm:$0xff] }
 0x164   : > { %1424 = vmatpush1.msra.mxu1 %v814_v31  ;;  %1354 = vmatprep.subr.mxu0 %v683_v32  ;;  %v647_v4 = vld [vmem:[#allocation5 + $0x838] sm:$0xff]  ;;  %v646_v6 = vld [vmem:[#allocation5 + $0x830] sm:$0xff] }
 0x165   : > { %1425 = vmatprep.subr.mxu1 %v811_v33  ;;  %1355 = vmatpush1.msra.mxu0 %v682_v34  ;;  %v775_v5 = vld [vmem:[#allocation5 + $0xc38] sm:$0xff]  ;;  %v774_v7 = vld [vmem:[#allocation5 + $0xc30] sm:$0xff] }
 0x166   : > { %1426 = vmatpush1.msra.mxu1 %v810_v35  ;;  %1356 = vmatprep.subr.mxu0 %v679_v36  ;;  %v643_v8 = vld [vmem:[#allocation5 + $0x818] sm:$0xff]  ;;  %v642_v10 = vld [vmem:[#allocation5 + $0x810] sm:$0xff] }
 0x167   : > { %1427 = vmatprep.subr.mxu1 %v807_v37  ;;  %1357 = vmatpush1.msra.mxu0 %v678_v38  ;;  %v771_v9 = vld [vmem:[#allocation5 + $0xc18] sm:$0xff]  ;;  %v770_v11 = vld [vmem:[#allocation5 + $0xc10] sm:$0xff] }
 0x168   : > { %1428 = vmatpush1.msra.mxu1 %v806_v39  ;;  %1358 = vmatprep.subr.mxu0 %v675_v40  ;;  %v767_v12 = vld [vmem:[#allocation5 + $0xbf8] sm:$0xff]  ;;  %v766_v14 = vld [vmem:[#allocation5 + $0xbf0] sm:$0xff] }
 0x169   : > { %1429 = vmatprep.subr.mxu1 %v803_v41  ;;  %1359 = vmatpush1.msra.mxu0 %v674_v42  ;;  %v895_v13 = vld [vmem:[#allocation5 + $0xff8] sm:$0xff]  ;;  %v894_v15 = vld [vmem:[#allocation5 + $0xff0] sm:$0xff] }
 0x16a   : > { %1430 = vmatpush1.msra.mxu1 %v802_v43  ;;  %1360 = vmatprep.subr.mxu0 %v671_v44  ;;  %v763_v16 = vld [vmem:[#allocation5 + $0xbd8] sm:$0xff]  ;;  %v762_v18 = vld [vmem:[#allocation5 + $0xbd0] sm:$0xff] }
 0x16b   : > { %1431 = vmatprep.subr.mxu1 %v799_v45  ;;  %1361 = vmatpush1.msra.mxu0 %v670_v46  ;;  %v891_v17 = vld [vmem:[#allocation5 + $0xfd8] sm:$0xff]  ;;  %v890_v19 = vld [vmem:[#allocation5 + $0xfd0] sm:$0xff] }
 0x16c   : > { %1432 = vmatpush1.msra.mxu1 %v798_v47  ;;  %1362 = vmatprep.subr.mxu0 %v667_v48  ;;  %v759_v20 = vld [vmem:[#allocation5 + $0xbb8] sm:$0xff]  ;;  %v758_v22 = vld [vmem:[#allocation5 + $0xbb0] sm:$0xff] }
 0x16d   : > { %1433 = vmatprep.subr.mxu1 %v795_v49  ;;  %1363 = vmatpush1.msra.mxu0 %v666_v50  ;;  %v887_v21 = vld [vmem:[#allocation5 + $0xfb8] sm:$0xff]  ;;  %v886_v23 = vld [vmem:[#allocation5 + $0xfb0] sm:$0xff] }
 0x16e   : > { %1434 = vmatpush1.msra.mxu1 %v794_v51  ;;  %1364 = vmatprep.subr.mxu0 %v663_v52  ;;  %v755_v24 = vld [vmem:[#allocation5 + $0xb98] sm:$0xff]  ;;  %v754_v26 = vld [vmem:[#allocation5 + $0xb90] sm:$0xff] }
 0x16f   : > { %1435 = vmatprep.subr.mxu1 %v791_v53  ;;  %1365 = vmatpush1.msra.mxu0 %v662_v54  ;;  %v883_v25 = vld [vmem:[#allocation5 + $0xf98] sm:$0xff]  ;;  %v882_v27 = vld [vmem:[#allocation5 + $0xf90] sm:$0xff] }
 0x170   : > { %1436 = vmatpush1.msra.mxu1 %v790_v55  ;;  %1366 = vmatprep.subr.mxu0 %v659_v56  ;;  %v751_v28 = vld [vmem:[#allocation5 + $0xb78] sm:$0xff]  ;;  %v750_v30 = vld [vmem:[#allocation5 + $0xb70] sm:$0xff] }
 0x171   : > { %1437 = vmatprep.subr.mxu1 %v787_v57  ;;  %1367 = vmatpush1.msra.mxu0 %v658_v58  ;;  %v879_v29 = vld [vmem:[#allocation5 + $0xf78] sm:$0xff]  ;;  %v878_v31 = vld [vmem:[#allocation5 + $0xf70] sm:$0xff] }
 0x172   : > { %1438 = vmatpush1.msra.mxu1 %v786_v59  ;;  %1368 = vmatprep.subr.mxu0 %v655_v60  ;;  %v747_v32 = vld [vmem:[#allocation5 + $0xb58] sm:$0xff]  ;;  %v746_v34 = vld [vmem:[#allocation5 + $0xb50] sm:$0xff] }
 0x173   : > { %1439 = vmatprep.subr.mxu1 %v783_v61  ;;  %1369 = vmatpush1.msra.mxu0 %v654_v62  ;;  %v875_v33 = vld [vmem:[#allocation5 + $0xf58] sm:$0xff]  ;;  %v874_v35 = vld [vmem:[#allocation5 + $0xf50] sm:$0xff] }
 0x174   : > { %1440 = vmatpush1.msra.mxu1 %v782_v63  ;;  %1370 = vmatprep.subr.mxu0 %v651_v0  ;;  %v743_v36 = vld [vmem:[#allocation5 + $0xb38] sm:$0xff]  ;;  %v742_v38 = vld [vmem:[#allocation5 + $0xb30] sm:$0xff] }
 0x175   : > { %1441 = vmatprep.subr.mxu1 %v779_v1  ;;  %1371 = vmatpush1.msra.mxu0 %v650_v2  ;;  %v871_v37 = vld [vmem:[#allocation5 + $0xf38] sm:$0xff]  ;;  %v870_v39 = vld [vmem:[#allocation5 + $0xf30] sm:$0xff] }
 0x176   : > { %1442 = vmatpush1.msra.mxu1 %v778_v3  ;;  %1372 = vmatprep.subr.mxu0 %v647_v4  ;;  %v739_v40 = vld [vmem:[#allocation5 + $0xb18] sm:$0xff]  ;;  %v738_v42 = vld [vmem:[#allocation5 + $0xb10] sm:$0xff] }
 0x177   : > { %1443 = vmatprep.subr.mxu1 %v775_v5  ;;  %1373 = vmatpush1.msra.mxu0 %v646_v6  ;;  %v867_v41 = vld [vmem:[#allocation5 + $0xf18] sm:$0xff]  ;;  %v866_v43 = vld [vmem:[#allocation5 + $0xf10] sm:$0xff] }
 0x178   : > { %1444 = vmatpush1.msra.mxu1 %v774_v7  ;;  %1374 = vmatprep.subr.mxu0 %v643_v8  ;;  %v735_v44 = vld [vmem:[#allocation5 + $0xaf8] sm:$0xff]  ;;  %v734_v46 = vld [vmem:[#allocation5 + $0xaf0] sm:$0xff] }
 0x179   : > { %1445 = vmatprep.subr.mxu1 %v771_v9  ;;  %1375 = vmatpush1.msra.mxu0 %v642_v10  ;;  %v863_v45 = vld [vmem:[#allocation5 + $0xef8] sm:$0xff]  ;;  %v862_v47 = vld [vmem:[#allocation5 + $0xef0] sm:$0xff] }
 0x17a   : > { %1446 = vmatpush1.msra.mxu1 %v770_v11  ;;  %1376 = vmatprep.subr.mxu0 %v767_v12  ;;  %v731_v48 = vld [vmem:[#allocation5 + $0xad8] sm:$0xff]  ;;  %v730_v50 = vld [vmem:[#allocation5 + $0xad0] sm:$0xff]  ;;  %v2215_v12 = vld [vmem:[%s2701_s1 + $0x28] sm:$0xff] }
 0x17b   : > { %1447 = vmatprep.subr.mxu1 %v895_v13  ;;  %1377 = vmatpush2.msra.mxu0 %v766_v14  ;;  %v859_v49 = vld [vmem:[#allocation5 + $0xed8] sm:$0xff]  ;;  %v858_v51 = vld [vmem:[#allocation5 + $0xed0] sm:$0xff] }
 0x17c   : > { %1448 = vmatpush2.msra.mxu1 %v894_v15  ;;  %1378 = vmatprep.subr.mxu0 %v763_v16  ;;  %v727_v52 = vld [vmem:[#allocation5 + $0xab8] sm:$0xff]  ;;  %v726_v54 = vld [vmem:[#allocation5 + $0xab0] sm:$0xff]  ;;  %v2217_v16 = vld [vmem:[%s2701_s1 + $0x20] sm:$0xff] }
 0x17d   : > { %1449 = vmatprep.subr.mxu1 %v891_v17  ;;  %1379 = vmatpush2.msra.mxu0 %v762_v18  ;;  %v855_v53 = vld [vmem:[#allocation5 + $0xeb8] sm:$0xff]  ;;  %v854_v55 = vld [vmem:[#allocation5 + $0xeb0] sm:$0xff] }
 0x17e   : > { %1450 = vmatpush2.msra.mxu1 %v890_v19  ;;  %1380 = vmatprep.subr.mxu0 %v759_v20  ;;  %v723_v56 = vld [vmem:[#allocation5 + $0xa98] sm:$0xff]  ;;  %v722_v58 = vld [vmem:[#allocation5 + $0xa90] sm:$0xff]  ;;  %v1518_v19 = vld [vmem:[#allocation8 + $0xe0] sm:$0xff] }
 0x17f   : > { %1451 = vmatprep.subr.mxu1 %v887_v21  ;;  %1381 = vmatpush2.msra.mxu0 %v758_v22  ;;  %v851_v57 = vld [vmem:[#allocation5 + $0xe98] sm:$0xff]  ;;  %v850_v59 = vld [vmem:[#allocation5 + $0xe90] sm:$0xff] }
 0x180   : > { %1452 = vmatpush2.msra.mxu1 %v886_v23  ;;  %1382 = vmatprep.subr.mxu0 %v755_v24  ;;  %v719_v60 = vld [vmem:[#allocation5 + $0xa78] sm:$0xff]  ;;  %v718_v62 = vld [vmem:[#allocation5 + $0xa70] sm:$0xff] }
 0x181   : > { %1453 = vmatprep.subr.mxu1 %v883_v25  ;;  %1383 = vmatpush2.msra.mxu0 %v754_v26  ;;  %v847_v61 = vld [vmem:[#allocation5 + $0xe78] sm:$0xff]  ;;  %v846_v63 = vld [vmem:[#allocation5 + $0xe70] sm:$0xff]  ;;  %v1582_v25 = vld [vmem:[#allocation8 + $0x2e0] sm:$0xff] }
 0x182   : > { %1454 = vmatpush2.msra.mxu1 %v882_v27  ;;  %1384 = vmatprep.subr.mxu0 %v751_v28  ;;  %v715_v0 = vld [vmem:[#allocation5 + $0xa58] sm:$0xff]  ;;  %v714_v2 = vld [vmem:[#allocation5 + $0xa50] sm:$0xff]  ;;  %v1514_v28 = vld [vmem:[#allocation8 + $0xc0] sm:$0xff] }
 0x183   : > { %1455 = vmatprep.subr.mxu1 %v879_v29  ;;  %1385 = vmatpush2.msra.mxu0 %v750_v30  ;;  %v843_v1 = vld [vmem:[#allocation5 + $0xe58] sm:$0xff]  ;;  %v842_v3 = vld [vmem:[#allocation5 + $0xe50] sm:$0xff] }
 0x184   : > { %1456 = vmatpush2.msra.mxu1 %v878_v31  ;;  %1386 = vmatprep.subr.mxu0 %v747_v32  ;;  %v711_v4 = vld [vmem:[#allocation5 + $0xa38] sm:$0xff]  ;;  %v710_v6 = vld [vmem:[#allocation5 + $0xa30] sm:$0xff] }
 0x185   : > { %1457 = vmatprep.subr.mxu1 %v875_v33  ;;  %1387 = vmatpush2.msra.mxu0 %v746_v34  ;;  %v839_v5 = vld [vmem:[#allocation5 + $0xe38] sm:$0xff]  ;;  %v838_v7 = vld [vmem:[#allocation5 + $0xe30] sm:$0xff]  ;;  %v1578_v33 = vld [vmem:[#allocation8 + $0x2c0] sm:$0xff] }
 0x186   : > { %1458 = vmatpush2.msra.mxu1 %v874_v35  ;;  %1388 = vmatprep.subr.mxu0 %v743_v36  ;;  %v707_v8 = vld [vmem:[#allocation5 + $0xa18] sm:$0xff]  ;;  %v706_v10 = vld [vmem:[#allocation5 + $0xa10] sm:$0xff]  ;;  %v1510_v36 = vld [vmem:[#allocation8 + $0xa0] sm:$0xff] }
 0x187   : > { %1459 = vmatprep.subr.mxu1 %v871_v37  ;;  %1389 = vmatpush2.msra.mxu0 %v742_v38  ;;  %v835_v9 = vld [vmem:[#allocation5 + $0xe18] sm:$0xff]  ;;  %v834_v11 = vld [vmem:[#allocation5 + $0xe10] sm:$0xff] }
 0x188   : > { %1460 = vmatpush2.msra.mxu1 %v870_v39  ;;  %1390 = vmatprep.subr.mxu0 %v739_v40  ;;  %v1521_v13 = vld [vmem:[#allocation8 + $0xf8] sm:$0xff]  ;;  %v1520_v15 = vld [vmem:[#allocation8 + $0xf0] sm:$0xff]  ;;  %v1519_v18 = vld [vmem:[#allocation8 + $0xe8] sm:$0xff] }
 0x189   : > { %1461 = vmatprep.subr.mxu1 %v867_v41  ;;  %1391 = vmatpush2.msra.mxu0 %v738_v42  ;;  %v2216_v14 = vld [vmem:[%s2701_s1 + $0x38] sm:$0xff]  ;;  %v2218_v17 = vld [vmem:[%s2701_s1 + $0x30] sm:$0xff]  ;;  %v1574_v41 = vld [vmem:[#allocation8 + $0x2a0] sm:$0xff] }
 0x18a   : > { %1462 = vmatpush2.msra.mxu1 %v866_v43  ;;  %1392 = vmatprep.subr.mxu0 %v735_v44  ;;  %v1517_v20 = vld [vmem:[#allocation8 + $0xd8] sm:$0xff]  ;;  %v1584_v22 = vld [vmem:[#allocation8 + $0x2f0] sm:$0xff]  ;;  %v1583_v23 = vld [vmem:[#allocation8 + $0x2e8] sm:$0xff] }
 0x18b   : > { %1463 = vmatprep.subr.mxu1 %v863_v45  ;;  %1393 = vmatpush2.msra.mxu0 %v734_v46  ;;  %v1585_v21 = vld [vmem:[#allocation8 + $0x2f8] sm:$0xff]  ;;  %v1516_v24 = vld [vmem:[#allocation8 + $0xd0] sm:$0xff]  ;;  %v1515_v26 = vld [vmem:[#allocation8 + $0xc8] sm:$0xff] }
 0x18c   : > { %1464 = vmatpush2.msra.mxu1 %v862_v47  ;;  %1394 = vmatprep.subr.mxu0 %v731_v48  ;;  %v1581_v27 = vld [vmem:[#allocation8 + $0x2d8] sm:$0xff]  ;;  %v1580_v29 = vld [vmem:[#allocation8 + $0x2d0] sm:$0xff]  ;;  %v1579_v31 = vld [vmem:[#allocation8 + $0x2c8] sm:$0xff] }
 0x18d   : > { %1465 = vmatprep.subr.mxu1 %v859_v49  ;;  %1395 = vmatpush2.msra.mxu0 %v730_v50  ;;  %v1513_v30 = vld [vmem:[#allocation8 + $0xb8] sm:$0xff]  ;;  %v1512_v32 = vld [vmem:[#allocation8 + $0xb0] sm:$0xff]  ;;  %v1511_v34 = vld [vmem:[#allocation8 + $0xa8] sm:$0xff] }
 0x18e   : > { %1466 = vmatpush2.msra.mxu1 %v858_v51  ;;  %1396 = vmatprep.subr.mxu0 %v727_v52  ;;  %v1577_v35 = vld [vmem:[#allocation8 + $0x2b8] sm:$0xff]  ;;  %v1576_v37 = vld [vmem:[#allocation8 + $0x2b0] sm:$0xff]  ;;  %v1575_v39 = vld [vmem:[#allocation8 + $0x2a8] sm:$0xff] }
 0x18f   : > { %1467 = vmatprep.subr.mxu1 %v855_v53  ;;  %1397 = vmatpush2.msra.mxu0 %v726_v54  ;;  %v1509_v38 = vld [vmem:[#allocation8 + $0x98] sm:$0xff]  ;;  %v1508_v40 = vld [vmem:[#allocation8 + $0x90] sm:$0xff]  ;;  %v1507_v42 = vld [vmem:[#allocation8 + $0x88] sm:$0xff] }
 0x190   : > { %1468 = vmatpush2.msra.mxu1 %v854_v55  ;;  %1398 = vmatprep.subr.mxu0 %v723_v56  ;;  %v1573_v43 = vld [vmem:[#allocation8 + $0x298] sm:$0xff]  ;;  %v1506_v44 = vld [vmem:[#allocation8 + $0x80] sm:$0xff]  ;;  %v1572_v45 = vld [vmem:[#allocation8 + $0x290] sm:$0xff] }
 0x191   : > { %1469 = vmatprep.subr.mxu1 %v851_v57  ;;  %1399 = vmatpush2.msra.mxu0 %v722_v58  ;;  %v1505_v46 = vld [vmem:[#allocation8 + $0x78] sm:$0xff]  ;;  %v1571_v47 = vld [vmem:[#allocation8 + $0x288] sm:$0xff]  ;;  %v1504_v48 = vld [vmem:[#allocation8 + $0x70] sm:$0xff] }
 0x192   : > { %1470 = vmatpush2.msra.mxu1 %v850_v59  ;;  %1400 = vmatprep.subr.mxu0 %v719_v60  ;;  %v1570_v49 = vld [vmem:[#allocation8 + $0x280] sm:$0xff]  ;;  %v1503_v50 = vld [vmem:[#allocation8 + $0x68] sm:$0xff]  ;;  %v1569_v51 = vld [vmem:[#allocation8 + $0x278] sm:$0xff] }
 0x193   : > { %1471 = vmatprep.subr.mxu1 %v847_v61  ;;  %1401 = vmatpush2.msra.mxu0 %v718_v62  ;;  %v1502_v52 = vld [vmem:[#allocation8 + $0x60] sm:$0xff]  ;;  %v1568_v53 = vld [vmem:[#allocation8 + $0x270] sm:$0xff]  ;;  %v1501_v54 = vld [vmem:[#allocation8 + $0x58] sm:$0xff] }
 0x194   : > { %1472 = vmatpush2.msra.mxu1 %v846_v63  ;;  %1402 = vmatprep.subr.mxu0 %v715_v0  ;;  %v1567_v55 = vld [vmem:[#allocation8 + $0x268] sm:$0xff]  ;;  %v1500_v56 = vld [vmem:[#allocation8 + $0x50] sm:$0xff]  ;;  %v1566_v57 = vld [vmem:[#allocation8 + $0x260] sm:$0xff] }
 0x195   : > { %1473 = vmatprep.subr.mxu1 %v843_v1  ;;  %1403 = vmatpush2.msra.mxu0 %v714_v2  ;;  %v1499_v58 = vld [vmem:[#allocation8 + $0x48] sm:$0xff]  ;;  %v1565_v59 = vld [vmem:[#allocation8 + $0x258] sm:$0xff]  ;;  %v1498_v60 = vld [vmem:[#allocation8 + $0x40] sm:$0xff] }
 0x196   : > { %1474 = vmatpush2.msra.mxu1 %v842_v3  ;;  %1404 = vmatprep.subr.mxu0 %v711_v4  ;;  %v1564_v61 = vld [vmem:[#allocation8 + $0x250] sm:$0xff]  ;;  %v1497_v62 = vld [vmem:[#allocation8 + $0x38] sm:$0xff]  ;;  %v1563_v63 = vld [vmem:[#allocation8 + $0x248] sm:$0xff] }
 0x197   : > { %1475 = vmatprep.subr.mxu1 %v839_v5  ;;  %1405 = vmatpush2.msra.mxu0 %v710_v6  ;;  %v1496_v0 = vld [vmem:[#allocation8 + $0x30] sm:$0xff]  ;;  %v1562_v1 = vld [vmem:[#allocation8 + $0x240] sm:$0xff]  ;;  %v1495_v2 = vld [vmem:[#allocation8 + $0x28] sm:$0xff] }
 0x198   : > { %1476 = vmatpush2.msra.mxu1 %v838_v7  ;;  %1406 = vmatprep.subr.mxu0 %v707_v8  ;;  %v1561_v3 = vld [vmem:[#allocation8 + $0x238] sm:$0xff]  ;;  %v1494_v4 = vld [vmem:[#allocation8 + $0x20] sm:$0xff]  ;;  %v1560_v5 = vld [vmem:[#allocation8 + $0x230] sm:$0xff] }
 0x199   : > { %1477 = vmatprep.subr.mxu1 %v835_v9  ;;  %1407 = vmatpush2.msra.mxu0 %v706_v10  ;;  %v1493_v6 = vld [vmem:[#allocation8 + $0x18] sm:$0xff]  ;;  %v1559_v7 = vld [vmem:[#allocation8 + $0x228] sm:$0xff]  ;;  %v1492_v8 = vld [vmem:[#allocation8 + $0x10] sm:$0xff] }
 0x19a   : > { %1408 = vmatprep.mubr.f32.mxu0 %v2215_v12  ;;  %1478 = vmatpush2.msra.mxu1 %v834_v11  ;;  %v1558_v9 = vld [vmem:[#allocation8 + $0x220] sm:$0xff]  ;;  %v1491_v10 = vld [vmem:[#allocation8 + $0x8] sm:$0xff]  ;;  %v1557_v11 = vld [vmem:[#allocation8 + $0x218] sm:$0xff] }
 0x19b   : > { %1479 = vmatprep.mubr.f32.mxu1 %v2216_v14  ;;  %1409 = vmatmul.mubr.f32.vlgmr.msra.gmra.mxu0 %v2217_v16  ;;  %v1490_v12 = vld [vmem:[#allocation8] sm:$0xff]  ;;  %v1553_v14 = vld [vmem:[#allocation8 + $0x1f8] sm:$0xff]  ;;  %v1552_v16 = vld [vmem:[#allocation8 + $0x1f0] sm:$0xff] }
 0x19c   : > { %1480 = vmatmul.mubr.f32.vlgmr.msra.gmra.mxu1 %v2218_v17  ;;  %1630 = vmatprep.subr.mxu0 %v1521_v13  ;;  %v1556_v13 = vld [vmem:[#allocation8 + $0x210] sm:$0xff]  ;;  %v1554_v17 = vld [vmem:[#allocation8 + $0x200] sm:$0xff] }
 0x19d   : > { %1631 = vmatpush1.msra.mxu0 %v1520_v15  ;;  %1701 = vmatprep.subr.mxu1 %v1585_v21  ;;  %v1555_v15 = vld [vmem:[#allocation8 + $0x208] sm:$0xff]  ;;  %v1616_v21 = vld [vmem:[#allocation8 + $0x3f0] sm:$0xff] }
 0x19e   : > { %1632 = vmatprep.subr.mxu0 %v1519_v18  ;;  %1702 = vmatpush1.msra.mxu1 %v1584_v22  ;;  %v1551_v18 = vld [vmem:[#allocation8 + $0x1e8] sm:$0xff]  ;;  %v1549_v22 = vld [vmem:[#allocation8 + $0x1d8] sm:$0xff] }
 0x19f   : > { %1633 = vmatpush1.msra.mxu0 %v1518_v19  ;;  %1703 = vmatprep.subr.mxu1 %v1583_v23  ;;  %v1617_v19 = vld [vmem:[#allocation8 + $0x3f8] sm:$0xff]  ;;  %v1615_v23 = vld [vmem:[#allocation8 + $0x3e8] sm:$0xff] }
 0x1a0   : > { %1634 = vmatprep.subr.mxu0 %v1517_v20  ;;  %1704 = vmatpush1.msra.mxu1 %v1582_v25  ;;  %v1550_v20 = vld [vmem:[#allocation8 + $0x1e0] sm:$0xff] }
 0x1a1   : > { %1635 = vmatpush1.msra.mxu0 %v1516_v24  ;;  %1705 = vmatprep.subr.mxu1 %v1581_v27  ;;  %v1548_v24 = vld [vmem:[#allocation8 + $0x1d0] sm:$0xff]  ;;  %v1614_v25 = vld [vmem:[#allocation8 + $0x3e0] sm:$0xff]  ;;  %v1613_v27 = vld [vmem:[#allocation8 + $0x3d8] sm:$0xff] }
 0x1a2   : > { %1636 = vmatprep.subr.mxu0 %v1515_v26  ;;  %1706 = vmatpush1.msra.mxu1 %v1580_v29  ;;  %v1547_v26 = vld [vmem:[#allocation8 + $0x1c8] sm:$0xff]  ;;  %v1612_v29 = vld [vmem:[#allocation8 + $0x3d0] sm:$0xff] }
 0x1a3   : > { %1637 = vmatpush1.msra.mxu0 %v1514_v28  ;;  %1707 = vmatprep.subr.mxu1 %v1579_v31  ;;  %v1546_v28 = vld [vmem:[#allocation8 + $0x1c0] sm:$0xff]  ;;  %v1545_v31 = vld [vmem:[#allocation8 + $0x1b8] sm:$0xff] }
 0x1a4   : > { %1638 = vmatprep.subr.mxu0 %v1513_v30  ;;  %1708 = vmatpush1.msra.mxu1 %v1578_v33  ;;  %v898_v30 = vlaneseq  ;;  %v1544_v33 = vld [vmem:[#allocation8 + $0x1b0] sm:$0xff] }
 0x1a5   : > { %1639 = vmatpush1.msra.mxu0 %v1512_v32  ;;  %1709 = vmatprep.subr.mxu1 %v1577_v35  ;;  %v1611_v32 = vld [vmem:[#allocation8 + $0x3c8] sm:$0xff] }
 0x1a6   : > { %1640 = vmatprep.subr.mxu0 %v1511_v34  ;;  %1710 = vmatpush1.msra.mxu1 %v1576_v37  ;;  %v1610_v34 = vld [vmem:[#allocation8 + $0x3c0] sm:$0xff]  ;;  %v1543_v35 = vld [vmem:[#allocation8 + $0x1a8] sm:$0xff] }
 0x1a7   : > { %1641 = vmatpush1.msra.mxu0 %v1510_v36  ;;  %1711 = vmatprep.subr.mxu1 %v1575_v39  ;;  %v1609_v36 = vld [vmem:[#allocation8 + $0x3b8] sm:$0xff]  ;;  %v1542_v37 = vld [vmem:[#allocation8 + $0x1a0] sm:$0xff]  ;;  %v2735_v39 = vshrl.u32 %v898_v30, 7 }
 0x1a8   : > { %1642 = vmatprep.subr.mxu0 %v1509_v38  ;;  %1712 = vmatpush1.msra.mxu1 %v1574_v41  ;;  %v1608_v38 = vld [vmem:[#allocation8 + $0x3b0] sm:$0xff]  ;;  %v1607_v41 = vld [vmem:[#allocation8 + $0x3a8] sm:$0xff]  ;;  %v1594_v30 = vld [vmem:[#allocation8 + $0x340] sm:$0xff] }
 0x1a9   : > { %1643 = vmatpush1.msra.mxu0 %v1508_v40  ;;  %1713 = vmatprep.subr.mxu1 %v1573_v43  ;;  %v1541_v40 = vld [vmem:[#allocation8 + $0x198] sm:$0xff]  ;;  %v1606_v43 = vld [vmem:[#allocation8 + $0x3a0] sm:$0xff] }
 0x1aa   : > { %1644 = vmatprep.subr.mxu0 %v1507_v42  ;;  %1714 = vmatpush1.msra.mxu1 %v1572_v45  ;;  %v1540_v42 = vld [vmem:[#allocation8 + $0x190] sm:$0xff]  ;;  %v1605_v45 = vld [vmem:[#allocation8 + $0x398] sm:$0xff] }
 0x1ab   : > { %1645 = vmatpush1.msra.mxu0 %v1506_v44  ;;  %1715 = vmatprep.subr.mxu1 %v1571_v47  ;;  %v1539_v44 = vld [vmem:[#allocation8 + $0x188] sm:$0xff]  ;;  %v1604_v47 = vld [vmem:[#allocation8 + $0x390] sm:$0xff] }
 0x1ac   : > { %1646 = vmatprep.subr.mxu0 %v1505_v46  ;;  %1716 = vmatpush1.msra.mxu1 %v1570_v49  ;;  %v1538_v46 = vld [vmem:[#allocation8 + $0x180] sm:$0xff]  ;;  %v1537_v49 = vld [vmem:[#allocation8 + $0x178] sm:$0xff] }
 0x1ad   : > { %1647 = vmatpush1.msra.mxu0 %v1504_v48  ;;  %1717 = vmatprep.subr.mxu1 %v1569_v51  ;;  %v900_v48 = vsub.s32 0, %v2735_v39  ;;  %v2738_v51 = vld [vmem:[#allocation7] sm:$0xf] }
 0x1ae   : > { %1648 = vmatprep.subr.mxu0 %v1503_v50  ;;  %1718 = vmatpush1.msra.mxu1 %v1568_v53  ;;  %v1603_v50 = vld [vmem:[#allocation8 + $0x388] sm:$0xff]  ;;  %v1602_v53 = vld [vmem:[#allocation8 + $0x380] sm:$0xff] }
 0x1af   : > { %1649 = vmatpush1.msra.mxu0 %v1502_v52  ;;  %1719 = vmatprep.subr.mxu1 %v1567_v55  ;;  %v1536_v52 = vld [vmem:[#allocation8 + $0x170] sm:$0xff]  ;;  %v1535_v55 = vld [vmem:[#allocation8 + $0x168] sm:$0xff] }
 0x1b0   : > { %1650 = vmatprep.subr.mxu0 %v1501_v54  ;;  %1720 = vmatpush1.msra.mxu1 %v1566_v57  ;;  %v904_v54 = vsub.s32 1, %v2735_v39  ;;  %v984_v57 = vpop.f32.mrf.mxu0 }
 0x1b1   : > { %1651 = vmatpush1.msra.mxu0 %v1500_v56  ;;  %1721 = vmatprep.subr.mxu1 %v1565_v59  ;;  %v1601_v56 = vld [vmem:[#allocation8 + $0x378] sm:$0xff]  ;;  %v1600_v59 = vld [vmem:[#allocation8 + $0x370] sm:$0xff] }
 0x1b2   : > { %1652 = vmatprep.subr.mxu0 %v1499_v58  ;;  %1722 = vmatpush1.msra.mxu1 %v1564_v61  ;;  %v1534_v58 = vld [vmem:[#allocation8 + $0x160] sm:$0xff]  ;;  %v1533_v61 = vld [vmem:[#allocation8 + $0x158] sm:$0xff] }
 0x1b3   : > { %1653 = vmatpush1.msra.mxu0 %v1498_v60  ;;  %1723 = vmatprep.subr.mxu1 %v1563_v63  ;;  %v901_v60 = vrot.slane %v2738_v51, %v900_v48  ;;  %v1532_v63 = vld [vmem:[#allocation8 + $0x150] sm:$0xff] }
 0x1b4   : > { %1654 = vmatprep.subr.mxu0 %v1497_v62  ;;  %1724 = vmatpush1.msra.mxu1 %v1562_v1  ;;  %v1599_v62 = vld [vmem:[#allocation8 + $0x368] sm:$0xff]  ;;  %v905_v1 = vrot.slane %v2738_v51, %v904_v54 }
 0x1b5   : > { %1655 = vmatpush1.msra.mxu0 %v1496_v0  ;;  %1725 = vmatprep.subr.mxu1 %v1561_v3  ;;  %v1598_v0 = vld [vmem:[#allocation8 + $0x360] sm:$0xff]  ;;  %v1597_v3 = vld [vmem:[#allocation8 + $0x358] sm:$0xff] }
 0x1b6   : > { %1656 = vmatprep.subr.mxu0 %v1495_v2  ;;  %1726 = vmatpush1.msra.mxu1 %v1560_v5  ;;  %v1531_v2 = vld [vmem:[#allocation8 + $0x148] sm:$0xff]  ;;  %v986_v5 = vpop.f32.mrf.mxu0 }
 0x1b7   : > { %1657 = vmatpush1.msra.mxu0 %v1494_v4  ;;  %1727 = vmatprep.subr.mxu1 %v1559_v7  ;;  %v1055_v4 = vpop.f32.mrf.mxu1  ;;  %v1596_v7 = vld [vmem:[#allocation8 + $0x350] sm:$0xff] }
 0x1b8   : > { %1658 = vmatprep.subr.mxu0 %v1493_v6  ;;  %1728 = vmatpush1.msra.mxu1 %v1558_v9  ;;  %v1530_v6 = vld [vmem:[#allocation8 + $0x140] sm:$0xff]  ;;  %v1529_v9 = vld [vmem:[#allocation8 + $0x138] sm:$0xff] }
 0x1b9   : > { %1659 = vmatpush1.msra.mxu0 %v1492_v8  ;;  %1729 = vmatprep.subr.mxu1 %v1557_v11  ;;  %v985_v8 = vadd.f32 %v984_v57, %v901_v60  ;;  %v987_v11 = vadd.f32 %v986_v5, %v905_v1  ;;  %v1799_v57 = vld [vmem:[#allocation11 + $0xc8] sm:$0xff]  ;;  %v1782_v60 = vld [vmem:[#allocation11 + $0x40] sm:$0xff]  ;;  %v908_v5 = vsub.s32 2, %v2735_v39 }
 0x1ba   : > { %1660 = vmatprep.subr.mxu0 %v1491_v10  ;;  %1730 = vmatpush1.msra.mxu1 %v1556_v13  ;;  %v1528_v10 = vld [vmem:[#allocation8 + $0x130] sm:$0xff]  ;;  %v1057_v13 = vpop.f32.mrf.mxu1 }
 0x1bb   : > { %1661 = vmatpush1.msra.mxu0 %v1490_v12  ;;  %1731 = vmatprep.subr.mxu1 %v1555_v15  ;;  %v1527_v12 = vld [vmem:[#allocation8 + $0x128] sm:$0xff]  ;;  %v1056_v15 = vadd.f32 %v1055_v4, %v985_v8  ;;  %v909_v8 = vrot.slane %v2738_v51, %v908_v5 }
 0x1bc   : > { %1662 = vmatprep.subr.mxu0 %v1553_v14  ;;  %1732 = vmatpush1.msra.mxu1 %v1554_v17  ;;  %v1526_v14 = vld [vmem:[#allocation8 + $0x120] sm:$0xff]  ;;  %v1795_v1 = vld [vmem:[#allocation11 + $0xa8] sm:$0xff] }
 0x1bd   : > { %1663 = vmatpush2.msra.mxu0 %v1552_v16  ;;  %1733 = vmatprep.subr.mxu1 %v1617_v19  ;;  %v1525_v16 = vld [vmem:[#allocation8 + $0x118] sm:$0xff]  ;;  %v1058_v19 = vadd.f32 %v1057_v13, %v987_v11  ;;  %v1778_v4 = vld [vmem:[#allocation11 + $0x20] sm:$0xff] }
 0x1be   : > { %1664 = vmatprep.subr.mxu0 %v1551_v18  ;;  %1734 = vmatpush2.msra.mxu1 %v1616_v21  ;;  %v1524_v18 = vld [vmem:[#allocation8 + $0x110] sm:$0xff]  ;;  %v1523_v21 = vld [vmem:[#allocation8 + $0x108] sm:$0xff] }
 0x1bf   : > { %1665 = vmatpush2.msra.mxu0 %v1550_v20  ;;  %1735 = vmatprep.subr.mxu1 %v1615_v23 }
 0x1c0   : > { %1666 = vmatprep.subr.mxu0 %v1549_v22  ;;  %1736 = vmatpush2.msra.mxu1 %v1614_v25 }
 0x1c1   : > { %1667 = vmatpush2.msra.mxu0 %v1548_v24  ;;  %1737 = vmatprep.subr.mxu1 %v1613_v27  ;;  %v1522_v24 = vld [vmem:[#allocation8 + $0x100] sm:$0xff] }
 0x1c2   : > { %1668 = vmatprep.subr.mxu0 %v1547_v26  ;;  %1738 = vmatpush2.msra.mxu1 %v1612_v29 }
 0x1c3   : > { %1669 = vmatpush2.msra.mxu0 %v1546_v28  ;;  %1739 = vmatprep.subr.mxu1 %v1611_v32  ;;  %v1595_v28 = vld [vmem:[#allocation8 + $0x348] sm:$0xff] }
 0x1c4   : > { %1670 = vmatprep.subr.mxu0 %v1545_v31  ;;  %1740 = vmatpush2.msra.mxu1 %v1610_v34  ;;  %v1593_v31 = vld [vmem:[#allocation8 + $0x338] sm:$0xff] }
 0x1c5   : > { %1671 = vmatpush2.msra.mxu0 %v1544_v33  ;;  %1741 = vmatprep.subr.mxu1 %v1609_v36  ;;  %v1592_v33 = vld [vmem:[#allocation8 + $0x330] sm:$0xff]  ;;  %v1590_v36 = vld [vmem:[#allocation8 + $0x320] sm:$0xff] }
 0x1c6   : > { %1672 = vmatprep.subr.mxu0 %v1543_v35  ;;  %1742 = vmatpush2.msra.mxu1 %v1608_v38  ;;  %v1591_v35 = vld [vmem:[#allocation8 + $0x328] sm:$0xff]  ;;  %v1588_v38 = vld [vmem:[#allocation8 + $0x310] sm:$0xff] }
 0x1c7   : > { %1673 = vmatpush2.msra.mxu0 %v1542_v37  ;;  %1743 = vmatprep.subr.mxu1 %v1607_v41  ;;  %v1589_v37 = vld [vmem:[#allocation8 + $0x318] sm:$0xff]  ;;  %v1586_v41 = vld [vmem:[#allocation8 + $0x300] sm:$0xff] }
 0x1c8   : > { %1674 = vmatprep.subr.mxu0 %v1541_v40  ;;  %1744 = vmatpush2.msra.mxu1 %v1606_v43  ;;  %v1587_v40 = vld [vmem:[#allocation8 + $0x308] sm:$0xff]  ;;  %v1789_v43 = vld [vmem:[#allocation11 + $0x78] sm:$0xff] }
 0x1c9   : > { %1675 = vmatpush2.msra.mxu0 %v1540_v42  ;;  %1745 = vmatprep.subr.mxu1 %v1605_v45  ;;  %v1805_v42 = vld [vmem:[#allocation11 + $0xf8] sm:$0xff]  ;;  %v1788_v45 = vld [vmem:[#allocation11 + $0x70] sm:$0xff] }
 0x1ca   : > { %1676 = vmatprep.subr.mxu0 %v1539_v44  ;;  %1746 = vmatpush2.msra.mxu1 %v1604_v47  ;;  %v1804_v44 = vld [vmem:[#allocation11 + $0xf0] sm:$0xff]  ;;  %v1787_v47 = vld [vmem:[#allocation11 + $0x68] sm:$0xff] }
 0x1cb   : > { %1677 = vmatpush2.msra.mxu0 %v1538_v46  ;;  %1747 = vmatprep.subr.mxu1 %v1603_v50  ;;  %v1803_v46 = vld [vmem:[#allocation11 + $0xe8] sm:$0xff]  ;;  %v1786_v50 = vld [vmem:[#allocation11 + $0x60] sm:$0xff] }
 0x1cc   : > { %1678 = vmatprep.subr.mxu0 %v1537_v49  ;;  %1748 = vmatpush2.msra.mxu1 %v1602_v53  ;;  %v1802_v49 = vld [vmem:[#allocation11 + $0xe0] sm:$0xff]  ;;  %v1785_v53 = vld [vmem:[#allocation11 + $0x58] sm:$0xff] }
 0x1cd   : > { %1679 = vmatpush2.msra.mxu0 %v1536_v52  ;;  %1749 = vmatprep.subr.mxu1 %v1601_v56  ;;  %v1801_v52 = vld [vmem:[#allocation11 + $0xd8] sm:$0xff]  ;;  %v1784_v56 = vld [vmem:[#allocation11 + $0x50] sm:$0xff] }
 0x1ce   : > { %1680 = vmatprep.subr.mxu0 %v1535_v55  ;;  %1750 = vmatpush2.msra.mxu1 %v1600_v59  ;;  %v1800_v55 = vld [vmem:[#allocation11 + $0xd0] sm:$0xff]  ;;  %v1798_v59 = vld [vmem:[#allocation11 + $0xc0] sm:$0xff] }
 0x1cf   : > { %1681 = vmatpush2.msra.mxu0 %v1534_v58  ;;  %1751 = vmatprep.subr.mxu1 %v1599_v62  ;;  %v1783_v58 = vld [vmem:[#allocation11 + $0x48] sm:$0xff]  ;;  %v1781_v62 = vld [vmem:[#allocation11 + $0x38] sm:$0xff] }
 0x1d0   : > { %1682 = vmatprep.subr.mxu0 %v1533_v61  ;;  %1752 = vmatpush2.msra.mxu1 %v1598_v0  ;;  %v1797_v61 = vld [vmem:[#allocation11 + $0xb8] sm:$0xff]  ;;  %v1780_v0 = vld [vmem:[#allocation11 + $0x30] sm:$0xff] }
 0x1d1   : > { %1683 = vmatpush2.msra.mxu0 %v1532_v63  ;;  %1753 = vmatprep.subr.mxu1 %v1597_v3  ;;  %v1796_v63 = vld [vmem:[#allocation11 + $0xb0] sm:$0xff]  ;;  %v1794_v3 = vld [vmem:[#allocation11 + $0xa0] sm:$0xff] }
 0x1d2   : > { %1684 = vmatprep.subr.mxu0 %v1531_v2  ;;  %1754 = vmatpush2.msra.mxu1 %v1596_v7  ;;  %v1779_v2 = vld [vmem:[#allocation11 + $0x28] sm:$0xff] }
 0x1d3   : > { %1685 = vmatpush2.msra.mxu0 %v1530_v6  ;;  %1755 = vmatprep.subr.mxu1 %v1595_v28  ;;  %v912_v6 = vsub.s32 3, %v2735_v39  ;;  %v1792_v28 = vld [vmem:[#allocation11 + $0x90] sm:$0xff] }
 0x1d4   : > { %1686 = vmatprep.subr.mxu0 %v1529_v9  ;;  %1756 = vmatpush2.msra.mxu1 %v1594_v30  ;;  %v1791_v30 = vld [vmem:[#allocation11 + $0x88] sm:$0xff] }
 0x1d5   : > { %1687 = vmatpush2.msra.mxu0 %v1528_v10  ;;  %1757 = vmatprep.subr.mxu1 %v1593_v31  ;;  %v913_v9 = vrot.slane %v2738_v51, %v912_v6  ;;  %v1793_v51 = vld [vmem:[#allocation11 + $0x98] sm:$0xff]  ;;  %v1775_v31 = vld [vmem:[#allocation11 + $0x8] sm:$0xff] }
 0x1d6   : > { %1688 = vmatprep.subr.mxu0 %v1527_v12  ;;  %1758 = vmatpush2.msra.mxu1 %v1592_v33  ;;  %v1774_v33 = vld [vmem:[#allocation11] sm:$0xff] }
 0x1d7   : > { %v1126_v17 = vpop.f32.mrf.mxu0  ;;  %1689 = vmatpush2.msra.mxu0 %v1526_v14  ;;  %1759 = vmatprep.subr.mxu1 %v1591_v35 }
 0x1d8   : > { %v1127_v20 = vadd.f32 %v1126_v17, %v1056_v15  ;;  %1690 = vmatprep.subr.mxu0 %v1525_v16  ;;  %1760 = vmatpush2.msra.mxu1 %v1590_v36 }
 0x1d9   : > { %v1197_v22 = vpop.f32.mrf.mxu1  ;;  %v1128_v23 = vpop.f32.mrf.mxu0  ;;  %1691 = vmatpush2.msra.mxu0 %v1524_v18  ;;  %1761 = vmatprep.subr.mxu1 %v1589_v37 }
 0x1da   : > { %v1129_v25 = vadd.f32 %v1128_v23, %v1058_v19  ;;  %v1198_v26 = vadd.f32 %v1197_v22, %v1127_v20  ;;  %1692 = vmatprep.subr.mxu0 %v1523_v21  ;;  %1762 = vmatpush2.msra.mxu1 %v1588_v38 }
 0x1db   : > { %v1199_v27 = vpop.f32.mrf.mxu1  ;;  %1693 = vmatpush2.msra.mxu0 %v1522_v24  ;;  %1763 = vmatprep.subr.mxu1 %v1587_v40 }
 0x1dc   : > { %v1200_v29 = vadd.f32 %v1199_v27, %v1129_v25  ;;  %v1486_v34 = vmax.f32 %v1198_v26, 0.0  ;;  %1764 = vmatpush2.msra.mxu1 %v1586_v41  ;;  %2059 = vmatprep.subr.mxu0 %v1805_v42  ;;  %v1777_v27 = vld [vmem:[#allocation11 + $0x18] sm:$0xff] }
 0x1de   : > { %v1487_v32 = vmax.f32 %v1200_v29, 0.0  ;;  %v1776_v29 = vld [vmem:[#allocation11 + $0x10] sm:$0xff] }
 0x1e0   : > { %1694 = vmatprep.mubr.f32.mxu0 %v1487_v32  ;;  %v1790_v32 = vld [vmem:[#allocation11 + $0x80] sm:$0xff] }
 0x1e1   : > { %1695 = vmatmul.mubr.f32.vlgmr.msra.gmra.mxu0 %v1486_v34  ;;  %v1618_v34 = vld [vmem:[#allocation10] sm:$0x3] }
 0x1e2   : > { %2060 = vmatpush3.msra.mxu0 %v1789_v43  ;;  %v1623_v36 = vrot.slane %v1618_v34, %v900_v48  ;;  %v1627_v37 = vrot.slane %v1618_v34, %v904_v54 }
 0x1e3   : > { %2061 = vmatprep.subr.mxu0 %v1804_v44 }
 0x1e4   : > { %2062 = vmatpush3.msra.mxu0 %v1788_v45 }
 0x1e5   : > { %2063 = vmatprep.subr.mxu0 %v1803_v46 }
 0x1e6   : > { %2064 = vmatpush3.msra.mxu0 %v1787_v47 }
 0x1e7   : > { %2065 = vmatprep.subr.mxu0 %v1802_v49 }
 0x1e8   : > { %2066 = vmatpush3.msra.mxu0 %v1786_v50  ;;  %v2052_v50 = vld [vmem:[#allocation13] ss:$0 sm:$0xff] }
 0x1e9   : > { %2067 = vmatprep.subr.mxu0 %v1801_v52 }
 0x1ea   : > { %2068 = vmatpush3.msra.mxu0 %v1785_v53 }
 0x1eb   : > { %2069 = vmatprep.subr.mxu0 %v1800_v55 }
 0x1ec   : > { %2070 = vmatpush3.msra.mxu0 %v1784_v56 }
 0x1ed   : > { %2071 = vmatprep.subr.mxu0 %v1799_v57 }
 0x1ee   : > { %2072 = vmatpush3.msra.mxu0 %v1783_v58 }
 0x1ef   : > { %2073 = vmatprep.subr.mxu0 %v1798_v59 }
 0x1f0   : > { %2074 = vmatpush3.msra.mxu0 %v1782_v60 }
 0x1f1   : > { %2075 = vmatprep.subr.mxu0 %v1797_v61 }
 0x1f2   : > { %2076 = vmatpush3.msra.mxu0 %v1781_v62 }
 0x1f3   : > { %2077 = vmatprep.subr.mxu0 %v1796_v63 }
 0x1f4   : > { %2078 = vmatpush3.msra.mxu0 %v1780_v0 }
 0x1f5   : > { %2079 = vmatprep.subr.mxu0 %v1795_v1 }
 0x1f6   : > { %2080 = vmatpush3.msra.mxu0 %v1779_v2 }
 0x1f7   : > { %2081 = vmatprep.subr.mxu0 %v1794_v3 }
 0x1f8   : > { %2082 = vmatpush3.msra.mxu0 %v1778_v4 }
 0x1f9   : > { %2083 = vmatprep.subr.mxu0 %v1793_v51 }
 0x1fa   : > { %2084 = vmatpush3.msra.mxu0 %v1777_v27 }
 0x1fb   : > { %2085 = vmatprep.subr.mxu0 %v1792_v28 }
 0x1fc   : > { %2086 = vmatpush3.msra.mxu0 %v1776_v29 }
 0x1fd   : > { %2087 = vmatprep.subr.mxu0 %v1791_v30 }
 0x1fe   : > { %2088 = vmatpush3.msra.mxu0 %v1775_v31 }
 0x1ff   : > { %2089 = vmatprep.subr.mxu0 %v1790_v32 }
 0x200   : > { %2090 = vmatpush3.msra.mxu0 %v1774_v33 }
 0x219   : > { %v1268_v7 = vpop.f32.mrf.mxu0 }
 0x21a   : > { %v1269_v12 = vadd.f32 %v1268_v7, %v909_v8 }
 0x21b   : > { %v1339_v10 = vpop.f32.mrf.mxu1  ;;  %v1270_v11 = vpop.f32.mrf.mxu0 }
 0x21c   : > { %v1271_v13 = vadd.f32 %v1270_v11, %v913_v9  ;;  %v1340_v15 = vadd.f32 %v1339_v10, %v1269_v12 }
 0x21d   : > { %v1341_v14 = vpop.f32.mrf.mxu1 }
 0x21e   : > { %v1342_v18 = vadd.f32 %v1341_v14, %v1271_v13 }
 0x25b   : > { %v1410_v16 = vpop.f32.mrf.mxu0 }
 0x25c   : > { %v1481_v17 = vpop.f32.mrf.mxu1  ;;  %v1411_v19 = vadd.f32 %v1410_v16, %v1340_v15 }
 0x25d   : > { %v1412_v20 = vpop.f32.mrf.mxu0 }
 0x25e   : > { %v1413_v21 = vadd.f32 %v1412_v20, %v1342_v18  ;;  %v1482_v22 = vadd.f32 %v1481_v17, %v1411_v19  ;;  %v1483_v23 = vpop.f32.mrf.mxu1 }
 0x260   : > { %v1484_v24 = vadd.f32 %v1483_v23, %v1413_v21  ;;  %v1488_v26 = vmax.f32 %v1482_v22, 0.0 }
 0x262   : > { %v1489_v25 = vmax.f32 %v1484_v24, 0.0 }
 0x264   : > { %1765 = vmatprep.mubr.f32.mxu1 %v1489_v25 }
 0x265   : > { %1766 = vmatmul.mubr.f32.vlgmr.msra.gmra.mxu1 %v1488_v26 }
 0x2a1   : > { %v1696_v35 = vpop.f32.mrf.mxu0 }
 0x2a2   : > { %v1697_v40 = vadd.f32 %v1696_v35, %v1623_v36 }
 0x2a3   : > { %v1698_v38 = vpop.f32.mrf.mxu0 }
 0x2a4   : > { %v1699_v42 = vadd.f32 %v1698_v38, %v1627_v37 }
 0x325   : > { %v1767_v41 = vpop.f32.mrf.mxu1 }
 0x326   : > { %v1768_v43 = vadd.f32 %v1767_v41, %v1697_v40 }
 0x327   : > { %v1769_v44 = vpop.f32.mrf.mxu1 }
 0x328   : > { %v1770_v45 = vadd.f32 %v1769_v44, %v1699_v42  ;;  %v1772_v47 = vmax.f32 %v1768_v43, 0.0 }
 0x32a   : > { %v1773_v46 = vmax.f32 %v1770_v45, 0.0 }
 0x32c   : > { %1877 = vmatprep.mubr.f32.mxu0 %v1773_v46 }
 0x32d   : > { %1878 = vmatmul.mubr.f32.vlgmr.msra.gmra.mxu0 %v1772_v47 }
 0x3ed   : > { %v2091_v49 = vpop.f32.mrf.mxu0 }
 0x3ef   : > { %v2092_v52 = vpop.f32.mrf.mxu0 }
 0x3f0   : > { %v2093_v48 = vadd.f32 %v2092_v52, %v2091_v49 }
 0x3f2   : > { %v1880_v39 = vadd.f32 %v2093_v48, %v2052_v50 }
 0x3f4   : > { %v2053_v54 = vmul.f32 -1.442695, %v1880_v39 }
 0x3f6   : > { %2207 = vpow2.f32 %v2053_v54 }
 0x403   : > { %v2208_v53 = vpop.eup %2207 }
 0x404   : > { %v1886_v55 = vadd.f32 1.0, %v2208_v53 }
 0x406   : > { %2209 = vrcp.f32 %v1886_v55 }
 0x413   : > { %v2210_v56 = vpop.eup %2209 }
 0x414   : > { %1889 = vst [vmem:[%s375_s21] sm:$0xff] %v2210_v56 }
 0x415   : > { %2416 = shalt.err (!%p2413_p4)
}
 0x416   : > { %s2417_s22 = scalar_lea.hbm %s2760_s17, 128  ;;  %s2421_s9 = scalar_lea.hbm %s2804_s7, 256 }
 0x417   : > { %p2418_p6 = scmp.ne.s32.totalorder %s2760_s17, %s2417_s22  ;;  %p2422_p1 = scmp.lt.s32.totalorder %s2760_s17, %s2804_s7 }
 0x418   : > { %p2423_p10 = scmp.lt.s32.totalorder %s2421_s9, %s2417_s22 }
 0x419   : > { %p2419_p5 = pnand %p2418_p6, %p2830_p13 }
 0x41a   : > { %p2424_p11 = por %p2423_p10, %p2422_p1 }
 0x41b   : > { %p2420_p8 = pneg %p2419_p5 }
 0x41d   : > { %p2425_p12 = pnand %p2424_p11, %p2420_p8 }
 0x41f   : > { %2428 = shalt.err (!%p2425_p12)
}
 0x420   : > { %2120 = dma.vmem_to_hbm [thread:$0]  (%p2830_p13), %s1905_s15, 128, %s2760_s17, %s1891_s12  }
 0x421 PF: > { %s1916_s8 = sand.u32 1, %s2467_s24   ;;  %p2831_p0 = scmp.ne.s32.totalorder %s2820_s23, 0 }
 0x422   : > { %p2832_p2 = scmp.ge.s32.totalorder %s2479_s27, 2  ;;  %s1917_s21 = scalar_lea.sflag [#allocation4], %s1916_s8 }
 0x424   : > { %p2146_p3 = pnand %p2832_p2, %p2831_p0 }
 0x426   : > { %p2147_p7 = pneg %p2146_p3 }
 0x428   : > { %2462 = dma.done.wait (%p2147_p7), %s1917_s21, 128  }
 0x429   : > { %2464 = vsyncadd (%p2147_p7), %s1917_s21, 4294967168  ;;  %p23_p9 = scmp.ge.s32.totalorder %s2634_s11, 4   ;;  %s2833_s24 = smov %s2471_s25 }
 0x42a   : > { %s2834_s25 = smov %s2475_s26  ;;  %s2835_s26 = smov %s2645_s19 }
 0x42b   : > { %s2836_s27 = smov %s2634_s11  ;;  %25 = sbr.rel (!%p23_p9) target bundleno = 11 (0xb), region = 117 }
 0x430   :  { %1922 = vsyncpa [#allocation3], 1 }
 0x431   :  { %1924 = vsyncpa [#allocation3 + $0x1], 1 }
 0x432   :  { %1925 = vsyncpa [#allocation6], 1 }
 0x433   :  { %1926 = vsyncpa [#allocation9], 1 }
 0x434   :  { %1927 = vsyncpa [#allocation12], 1 }
 0x435   :  { %1928 = vsyncpa [#allocation4], 1 }
 0x436   :  { %1930 = vsyncpa [#allocation4 + $0x1], 1 }

</bundles_post_ra>
